<compile_context>
chip_gen: v5e
topology: v5e:2x2
jax: 0.10.0
libtpu: 0.0.40
codegen_flags: <defaults>
</compile_context>

<pallas_src>
import jax
import jax.numpy as jnp
from jax.experimental import pallas as pl
from jax.experimental.pallas import tpu as pltpu

_LANE = 128


def _round_up(x, m):
    return (x + m - 1) // m * m


def _sublane(dtype):
    # f32 -> 8 rows, bf16 -> 16, int8/fp8 -> 32 rows per packed sublane tile.
    return max(8, 32 // jnp.dtype(dtype).itemsize)


def _autoencoder_kernel(x_ref, w1_ref, b1_ref, w2_ref, b2_ref, out_ref):
    # ---- Encoder: Linear + ReLU ------------------------------------------
    x = x_ref[...]
    if x.dtype != w1_ref.dtype:
        # Consistent MXU input dtype (single-pass bf16 path on v6e/v7x when
        # the weights are bf16); trace-time no-op for f32 weights.
        x = x.astype(w1_ref.dtype)
    h = jnp.dot(x, w1_ref[...], preferred_element_type=jnp.float32)
    h = jnp.maximum(h + b1_ref[...], 0.0)      # b1 is (1, c_pad), broadcasts

    # ---- Decoder: Linear + exact Sigmoid ----------------------------------
    y = jnp.dot(h.astype(w2_ref.dtype), w2_ref[...],
                preferred_element_type=jnp.float32)
    y = y + b2_ref[...]                        # b2 is (1, input_dims)
    # Exact sigmoid: the kernel is HBM-bound, so the full-precision divide is
    # free filler under DMA slack (per perf review).
    y = 1.0 / (1.0 + jnp.exp(-y))
    out_ref[...] = y.astype(out_ref.dtype)


def autoencoder_forward(x, w1, b1, w2, b2, *, tile_rows=None):
    """x: (..., input_dims) -> reconstruction (N, input_dims).

    w1: (input_dims, code_dims), b1: (code_dims,) or (1, code_dims)
    w2: (code_dims, input_dims), b2: (input_dims,) or (1, input_dims)
    """
    input_dims, code_dims = w1.shape
    x2d = x.reshape(-1, input_dims)            # torch's x.view(-1, input_dims)
    n = x2d.shape[0]

    act_dt = x2d.dtype
    act_bytes = jnp.dtype(act_dt).itemsize
    w_bytes = jnp.dtype(w1.dtype).itemsize
    sub = _sublane(act_dt)

    # ---- per-chip VMEM budget ----------------------------------------------
    try:
        vmem_cap = pltpu.get_tpu_info().vmem_capacity_bytes
    except Exception:  # non-TPU / interpret fallback: assume the smallest chip
        vmem_cap = 64 * 1024 * 1024            # v7x per-TC physical VMEM
    vmem_budget = int(0.75 * vmem_cap)         # ~48 MiB v7x, ~96 MiB v5e/v6e

    # ---- lane-dense padding of the hidden (code) dim only (tiny, one-time) --
    c_pad = _round_up(code_dims, _LANE)

    # ---- row tiling ----------------------------------------------------------
    if tile_rows is None:
        # Let the double-buffered x/out streams use ~half the scoped budget.
        bytes_per_row = 2 * input_dims * act_bytes            # x row + out row
        budget_rows = max(sub, (vmem_budget // 2) // (2 * bytes_per_row))
        tile_rows = min(budget_rows, 2048)
        # Only split into multiple tiles when there is enough data to make
        # per-step overhead (~0.35us) and DMA latency worth hiding; >=2 steps
        # also lets the "parallel" axis shard across v7x's two TensorCores.
        if n * input_dims * act_bytes >= (4 << 20):
            tile_rows = min(tile_rows, _round_up(pl.cdiv(n, 2), sub))
    tile_rows = max(sub, (tile_rows // sub) * sub)
    tile_rows = min(tile_rows, _round_up(n, sub))

    grid = (pl.cdiv(n, tile_rows),)            # ragged last block is masked

    # ---- pad only the weight/bias hidden dims (exact zeros through the math) -
    w1p = jnp.pad(w1, ((0, 0), (0, c_pad - code_dims)))
    b1p = jnp.pad(b1.reshape(1, -1), ((0, 0), (0, c_pad - code_dims)))
    w2p = jnp.pad(w2, ((0, c_pad - code_dims), (0, 0)))
    b2p = b2.reshape(1, -1)

    # ---- constant (revisited) operands: single-buffer them once they are big -
    weight_total_bytes = w_bytes * (input_dims * c_pad * 2 + c_pad + input_dims)
    single_buffer_weights = weight_total_bytes > (2 << 20)

    def _const_spec(shape):
        if single_buffer_weights:
            return pl.BlockSpec(shape, lambda i: (0, 0),
                                pipeline_mode=pl.Buffered(1))
        return pl.BlockSpec(shape, lambda i: (0, 0))

    # ---- explicit VMEM limit: streams + weights + f32 intermediates ----------
    stream_bytes = 4 * tile_rows * input_dims * act_bytes     # x + out, 2x buf
    wbuf = 1 if single_buffer_weights else 2
    weight_bytes = wbuf * weight_total_bytes
    interm_bytes = 4 * tile_rows * (c_pad + input_dims)       # f32 h and y
    vmem_limit = int(1.5 * (stream_bytes + weight_bytes + interm_bytes)) + (2 << 20)
    vmem_limit = min(vmem_budget, max(16 * 1024 * 1024, vmem_limit))

    out = pl.pallas_call(
        _autoencoder_kernel,
        out_shape=jax.ShapeDtypeStruct((n, input_dims), act_dt),
        grid_spec=pltpu.PrefetchScalarGridSpec(
            num_scalar_prefetch=0,
            grid=grid,
            in_specs=[
                # Streamed x tile: last dim equals the full array dim, so no
                # lane padding / wrapper copy is needed even if input_dims
                # is not a multiple of 128.
                pl.BlockSpec((tile_rows, input_dims), lambda i: (i, 0)),
                _const_spec((input_dims, c_pad)),              # W1
                _const_spec((1, c_pad)),                       # b1
                _const_spec((c_pad, input_dims)),              # W2
                _const_spec((1, input_dims)),                  # b2
            ],
            out_specs=pl.BlockSpec((tile_rows, input_dims), lambda i: (i, 0)),
        ),
        compiler_params=pltpu.CompilerParams(
            dimension_semantics=("parallel",),
            vmem_limit_bytes=vmem_limit,
        ),
    )(x2d, w1p, b1p, w2p, b2p)

    return out


def init_params(key, input_dims, code_dims, dtype=jnp.float32):
    """Deterministic init mimicking torch.nn.Linear's U(-1/sqrt(fan_in), ...)."""
    k1, k2, k3, k4 = jax.random.split(key, 4)
    bound1 = 1.0 / (input_dims ** 0.5)
    bound2 = 1.0 / (code_dims ** 0.5)
    w1 = jax.random.uniform(k1, (input_dims, code_dims), dtype, -bound1, bound1)
    b1 = jax.random.uniform(k2, (code_dims,), dtype, -bound1, bound1)
    w2 = jax.random.uniform(k3, (code_dims, input_dims), dtype, -bound2, bound2)
    b2 = jax.random.uniform(k4, (input_dims,), dtype, -bound2, bound2)
    return w1, b1, w2, b2


if __name__ == "__main__":
    input_dims = 64
    code_dims = 32
    batch = 512

    key = jax.random.PRNGKey(0)
    kx, kp = jax.random.split(key)
    x = jax.random.normal(kx, (batch, input_dims), jnp.float32)
    w1, b1, w2, b2 = init_params(kp, input_dims, code_dims)

    fwd = jax.jit(autoencoder_forward)
    out = jax.block_until_ready(fwd(x, w1, b1, w2, b2))

    # Pure-JAX reference of the same math (exact sigmoid).
    h_ref = jnp.maximum(x @ w1 + b1, 0.0)
    y_ref = jax.nn.sigmoid(h_ref @ w2 + b2)
    assert out.shape == (batch, input_dims)
    assert jnp.allclose(out, y_ref, atol=1e-5, rtol=1e-5), "mismatch vs reference"

    print("KERNEL_OK")
</pallas_src>

<mosaic_0001>
module attributes {stable_mosaic.version = 11 : i64} {
  func.func @_autoencoder_kernel(%arg0: i32, %arg1: memref<512x64xf32, #tpu.memory_space<vmem>>, %arg2: memref<64x128xf32, #tpu.memory_space<vmem>>, %arg3: memref<1x128xf32, #tpu.memory_space<vmem>>, %arg4: memref<128x64xf32, #tpu.memory_space<vmem>>, %arg5: memref<1x64xf32, #tpu.memory_space<vmem>>, %arg6: memref<512x64xf32, #tpu.memory_space<vmem>>) attributes {dimension_semantics = [#tpu.dimension_semantics<parallel>], iteration_bounds = array<i64: 1>, scalar_prefetch = 0 : i64, scratch_operands = 0 : i64, tpu.core_type = #tpu.core_type<tc>, window_params = [{transform_indices = @transform_0, window_bounds = array<i64: 512, 64>}, {pipeline_mode = #tpu.pipeline_mode<synchronous>, transform_indices = @transform_1, window_bounds = array<i64: 64, 128>}, {pipeline_mode = #tpu.pipeline_mode<synchronous>, transform_indices = @transform_2, window_bounds = array<i64: 1, 128>}, {pipeline_mode = #tpu.pipeline_mode<synchronous>, transform_indices = @transform_3, window_bounds = array<i64: 128, 64>}, {pipeline_mode = #tpu.pipeline_mode<synchronous>, transform_indices = @transform_4, window_bounds = array<i64: 1, 64>}, {transform_indices = @transform_5, window_bounds = array<i64: 512, 64>}]} {
    %c0 = arith.constant 0 : index
    %c0_0 = arith.constant 0 : index
    %0 = vector.load %arg1[%c0, %c0_0] : memref<512x64xf32, #tpu.memory_space<vmem>>, vector<512x64xf32>
    %c0_1 = arith.constant 0 : index
    %c0_2 = arith.constant 0 : index
    %1 = vector.load %arg2[%c0_1, %c0_2] : memref<64x128xf32, #tpu.memory_space<vmem>>, vector<64x128xf32>
    %cst = arith.constant dense<0.000000e+00> : vector<512x128xf32>
    %2 = tpu.matmul %0, %1, %cst {dimension_numbers = #tpu.dot_dimension_numbers<[1], [0], [0], [1], [0, 0, 1, 1], [], []>} : vector<512x64xf32>, vector<64x128xf32>, vector<512x128xf32> -> vector<512x128xf32>
    %c0_3 = arith.constant 0 : index
    %c0_4 = arith.constant 0 : index
    %3 = vector.load %arg3[%c0_3, %c0_4] : memref<1x128xf32, #tpu.memory_space<vmem>>, vector<1x128xf32>
    %4 = vector.broadcast %3 : vector<1x128xf32> to vector<512x128xf32>
    %5 = arith.addf %2, %4 : vector<512x128xf32>
    %cst_5 = arith.constant 0.000000e+00 : f32
    %6 = vector.broadcast %cst_5 : f32 to vector<512x128xf32>
    %7 = arith.maximumf %5, %6 : vector<512x128xf32>
    %c0_6 = arith.constant 0 : index
    %c0_7 = arith.constant 0 : index
    %8 = vector.load %arg4[%c0_6, %c0_7] : memref<128x64xf32, #tpu.memory_space<vmem>>, vector<128x64xf32>
    %cst_8 = arith.constant dense<0.000000e+00> : vector<512x64xf32>
    %9 = tpu.matmul %7, %8, %cst_8 {dimension_numbers = #tpu.dot_dimension_numbers<[1], [0], [0], [1], [0, 0, 1, 1], [], []>} : vector<512x128xf32>, vector<128x64xf32>, vector<512x64xf32> -> vector<512x64xf32>
    %c0_9 = arith.constant 0 : index
    %c0_10 = arith.constant 0 : index
    %10 = vector.load %arg5[%c0_9, %c0_10] : memref<1x64xf32, #tpu.memory_space<vmem>>, vector<1x64xf32>
    %11 = vector.broadcast %10 : vector<1x64xf32> to vector<512x64xf32>
    %12 = arith.addf %9, %11 : vector<512x64xf32>
    %cst_11 = arith.constant 0.000000e+00 : f32
    %13 = vector.broadcast %cst_11 : f32 to vector<512x64xf32>
    %14 = arith.subf %13, %12 : vector<512x64xf32>
    %15 = math.exp %14 : vector<512x64xf32>
    %cst_12 = arith.constant 1.000000e+00 : f32
    %16 = vector.broadcast %cst_12 : f32 to vector<512x64xf32>
    %17 = arith.addf %16, %15 : vector<512x64xf32>
    %cst_13 = arith.constant 1.000000e+00 : f32
    %18 = vector.broadcast %cst_13 : f32 to vector<512x64xf32>
    %19 = arith.divf %18, %17 : vector<512x64xf32>
    %c0_14 = arith.constant 0 : index
    %c0_15 = arith.constant 0 : index
    %20 = vector.load %arg6[%c0_14, %c0_15] : memref<512x64xf32, #tpu.memory_space<vmem>>, vector<512x64xf32>
    tpu.vector_store %arg6[%c0_14, %c0_15], %19 {strides = array<i32>} : memref<512x64xf32, #tpu.memory_space<vmem>>, vector<512x64xf32>,
    return
  }
  func.func @transform_0(%arg0: i32) -> (i32, i32) {
    %c0_i32 = arith.constant 0 : i32
    %c0_i32_0 = arith.constant 0 : i32
    return %arg0, %c0_i32 : i32, i32
  }
  func.func @transform_1(%arg0: i32) -> (i32, i32) {
    %c0_i32 = arith.constant 0 : i32
    %c0_i32_0 = arith.constant 0 : i32
    %c0_i32_1 = arith.constant 0 : i32
    return %c0_i32, %c0_i32_0 : i32, i32
  }
  func.func @transform_2(%arg0: i32) -> (i32, i32) {
    %c0_i32 = arith.constant 0 : i32
    %c0_i32_0 = arith.constant 0 : i32
    %c0_i32_1 = arith.constant 0 : i32
    return %c0_i32, %c0_i32_0 : i32, i32
  }
  func.func @transform_3(%arg0: i32) -> (i32, i32) {
    %c0_i32 = arith.constant 0 : i32
    %c0_i32_0 = arith.constant 0 : i32
    %c0_i32_1 = arith.constant 0 : i32
    return %c0_i32, %c0_i32_0 : i32, i32
  }
  func.func @transform_4(%arg0: i32) -> (i32, i32) {
    %c0_i32 = arith.constant 0 : i32
    %c0_i32_0 = arith.constant 0 : i32
    %c0_i32_1 = arith.constant 0 : i32
    return %c0_i32, %c0_i32_0 : i32, i32
  }
  func.func @transform_5(%arg0: i32) -> (i32, i32) {
    %c0_i32 = arith.constant 0 : i32
    %c0_i32_0 = arith.constant 0 : i32
    return %arg0, %c0_i32 : i32, i32
  }
}

</mosaic_0001>

<bundles_post_ra>
// kernel: autoencoder_forward.1
= control target key start
LH: loop header
LB: loop body
LE: loop exit
PB: predicated region body
PF: predicated region fallthrough
CT: control target
= control target key end

     0   :  { %vm96_vm0 = vcmask 523264   ;;  %s3414_s1 = inlined_call_operand.vmem [shape: f32[64,128], index: 1, kind: input, shape index: {}]   ;;  %s3415_s2 = inlined_call_operand.vmem [shape: f32[1,128], index: 2, kind: input, shape index: {}]   ;;  %s3416_s0 = inlined_call_operand.vmem [shape: f32[512,64], index: 0, kind: input, shape index: {}]   ;;  %s3417_s3 = inlined_call_operand.vmem [shape: f32[128,64], index: 3, kind: input, shape index: {}]   ;;  %s3418_s4 = inlined_call_operand.vmem [shape: f32[1,64], index: 4, kind: input, shape index: {}]   ;;  %s3419_s5 = inlined_call_operand.vmem [shape: f32[512,64], index: 5, kind: output, shape index: {}]  }
   0x1   :  { %v91_v0 = vld [vmem:[%s3414_s1 + $0x38] sm:$0xff]  ;;  %v90_v1 = vld [vmem:[%s3414_s1 + $0x30] sm:$0xff]  ;;  %v89_v2 = vld [vmem:[%s3414_s1 + $0x28] sm:$0xff] }
   0x2   :  { %297 = vmatpush.msra.mxu0 %v91_v0  ;;  %2139 = vmatpush.msra.mxu3 %v91_v0  ;;  %v88_v3 = vld [vmem:[%s3414_s1 + $0x20] sm:$0xff]  ;;  %v87_v4 = vld [vmem:[%s3414_s1 + $0x18] sm:$0xff]  ;;  %v86_v5 = vld [vmem:[%s3414_s1 + $0x10] sm:$0xff] }
   0x3   :  { %v85_v6 = vld [vmem:[%s3414_s1 + $0x8] sm:$0xff]  ;;  %v84_v7 = vld [vmem:[%s3414_s1] sm:$0xff]  ;;  %v22_v10 = vld [vmem:[%s3416_s0 + $0x10] sm:$0xff] }
   0x4   :  { %298 = vmatpush.msra.mxu0 %v90_v1  ;;  %2140 = vmatpush.msra.mxu3 %v90_v1  ;;  %v20_v8 = vld [vmem:[%s3416_s0] sm:$0xff]  ;;  %v21_v9 = vld [vmem:[%s3416_s0 + $0x8] sm:$0xff]  ;;  %v23_v11 = vld [vmem:[%s3416_s0 + $0x18] sm:$0xff] }
   0x5   :  { %v24_v12 = vld [vmem:[%s3416_s0 + $0x20] sm:$0xff]  ;;  %v25_v13 = vld [vmem:[%s3416_s0 + $0x28] sm:$0xff]  ;;  %v26_v14 = vld [vmem:[%s3416_s0 + $0x30] sm:$0xff] }
   0x6   :  { %299 = vmatpush.msra.mxu0 %v89_v2  ;;  %2141 = vmatpush.msra.mxu3 %v89_v2  ;;  %v27_v15 = vld [vmem:[%s3416_s0 + $0x38] sm:$0xff]  ;;  %v28_v16 = vld [vmem:[%s3416_s0 + $0x40] sm:$0xff]  ;;  %v576_v18 = vld [vmem:[%s3417_s3 + $0x70] sm:$0xff] }
   0x7   :  { %v577_v17 = vld [vmem:[%s3417_s3 + $0x78] sm:$0xff]  ;;  %v575_v19 = vld [vmem:[%s3417_s3 + $0x68] sm:$0xff]  ;;  %v574_v21 = vld [vmem:[%s3417_s3 + $0x60] sm:$0xff] }
   0x8   :  { %300 = vmatpush.msra.mxu0 %v88_v3  ;;  %2142 = vmatpush.msra.mxu3 %v88_v3  ;;  %v29_v20 = vld [vmem:[%s3416_s0 + $0x48] sm:$0xff]  ;;  %v573_v22 = vld [vmem:[%s3417_s3 + $0x58] sm:$0xff]  ;;  %v572_v23 = vld [vmem:[%s3417_s3 + $0x50] sm:$0xff] }
   0x9   :  { %582 = vmatpush.msra.mxu1 %v577_v17  ;;  %2147 = vmatpush.msra.mxu2 %v577_v17  ;;  %v571_v24 = vld [vmem:[%s3417_s3 + $0x48] sm:$0xff]  ;;  %v30_v25 = vld [vmem:[%s3416_s0 + $0x50] sm:$0xff]  ;;  %v570_v26 = vld [vmem:[%s3417_s3 + $0x40] sm:$0xff] }
   0xa   :  { %301 = vmatpush.msra.mxu0 %v87_v4  ;;  %2143 = vmatpush.msra.mxu3 %v87_v4  ;;  %v569_v27 = vld [vmem:[%s3417_s3 + $0x38] sm:$0xff]  ;;  %v568_v28 = vld [vmem:[%s3417_s3 + $0x30] sm:$0xff]  ;;  %v567_v29 = vld [vmem:[%s3417_s3 + $0x28] sm:$0xff] }
   0xb   :  { %583 = vmatpush.msra.mxu1 %v576_v18  ;;  %2149 = vmatpush.msra.mxu2 %v576_v18  ;;  %v31_v30 = vld [vmem:[%s3416_s0 + $0x58] sm:$0xff]  ;;  %v566_v31 = vld [vmem:[%s3417_s3 + $0x20] sm:$0xff]  ;;  %v564_v33 = vld [vmem:[%s3417_s3 + $0x10] sm:$0xff] }
   0xc   :  { %302 = vmatpush.msra.mxu0 %v86_v5  ;;  %2144 = vmatpush.msra.mxu3 %v86_v5  ;;  %v565_v32 = vld [vmem:[%s3417_s3 + $0x18] sm:$0xff]  ;;  %v32_v34 = vld [vmem:[%s3416_s0 + $0x60] sm:$0xff]  ;;  %v563_v35 = vld [vmem:[%s3417_s3 + $0x8] sm:$0xff] }
   0xd   :  { %584 = vmatpush.msra.mxu1 %v575_v19  ;;  %2151 = vmatpush.msra.mxu2 %v575_v19  ;;  %v562_v36 = vld [vmem:[%s3417_s3] sm:$0xff]  ;;  %v33_v37 = vld [vmem:[%s3416_s0 + $0x68] sm:$0xff]  ;;  %v34_v38 = vld [vmem:[%s3416_s0 + $0x70] sm:$0xff] }
   0xe   :  { %303 = vmatpush.msra.mxu0 %v85_v6  ;;  %2145 = vmatpush.msra.mxu3 %v85_v6  ;;  %v35_v39 = vld [vmem:[%s3416_s0 + $0x78] sm:$0xff]  ;;  %v2611_v40 = vld [vmem:[%s3415_s2] ss:$0 sm:$0xff]  ;;  %v37_v46 = vld [vmem:[%s3416_s0 + $0x88] sm:$0xff] }
   0xf   :  { %585 = vmatpush.msra.mxu1 %v574_v21  ;;  %2153 = vmatpush.msra.mxu2 %v574_v21  ;;  %v36_v42 = vld [vmem:[%s3416_s0 + $0x80] sm:$0xff]  ;;  %v38_v50 = vld [vmem:[%s3416_s0 + $0x90] sm:$0xff]  ;;  %v39_v54 = vld [vmem:[%s3416_s0 + $0x98] sm:$0xff] }
  0x10   :  { %304 = vmatpush.msra.mxu0 %v84_v7  ;;  %2146 = vmatpush.msra.mxu3 %v84_v7  ;;  %v40_v58 = vld [vmem:[%s3416_s0 + $0xa0] sm:$0xff]  ;;  %v41_v62 = vld [vmem:[%s3416_s0 + $0xa8] sm:$0xff]  ;;  %v42_v2 = vld [vmem:[%s3416_s0 + $0xb0] sm:$0xff] }
  0x11   :  { %2075 = vmatmul.msk.f32.vlgmr.msra.gmra.mxu0 %vm96_vm0, %v20_v8  ;;  %586 = vmatpush.msra.mxu1 %v573_v22  ;;  %v43_v6 = vld [vmem:[%s3416_s0 + $0xb8] sm:$0xff] }
  0x12   :  { %2148 = vmatpush.msrb.mxu3 %v577_v17  ;;  %2155 = vmatpush.msra.mxu2 %v573_v22 }
  0x13   :  { %587 = vmatpush.msra.mxu1 %v572_v23 }
  0x14   :  { %2150 = vmatpush.msrb.mxu3 %v576_v18  ;;  %2157 = vmatpush.msra.mxu2 %v572_v23  ;;  %v54_v18 = vld [vmem:[%s3416_s0 + $0x110] sm:$0xff] }
  0x15   :  { %588 = vmatpush.msra.mxu1 %v571_v24 }
  0x16   :  { %2152 = vmatpush.msrb.mxu3 %v575_v19  ;;  %2159 = vmatpush.msra.mxu2 %v571_v24 }
  0x17   :  { %589 = vmatpush.msra.mxu1 %v570_v26 }
  0x18   :  { %2154 = vmatpush.msrb.mxu3 %v574_v21  ;;  %2161 = vmatpush.msra.mxu2 %v570_v26 }
  0x19   :  { %2076 = vmatmul.msk.f32.gmra.mxu0 %vm96_vm0, %v21_v9  ;;  %590 = vmatpush.msra.mxu1 %v569_v27 }
  0x1a   :  { %2156 = vmatpush.msrb.mxu3 %v573_v22  ;;  %2163 = vmatpush.msra.mxu2 %v569_v27 }
  0x1b   :  { %591 = vmatpush.msra.mxu1 %v568_v28 }
  0x1c   :  { %2158 = vmatpush.msrb.mxu3 %v572_v23  ;;  %2165 = vmatpush.msra.mxu2 %v568_v28  ;;  %v55_v23 = vld [vmem:[%s3416_s0 + $0x118] sm:$0xff] }
  0x1d   :  { %592 = vmatpush.msra.mxu1 %v567_v29 }
  0x1e   :  { %2160 = vmatpush.msrb.mxu3 %v571_v24  ;;  %2167 = vmatpush.msra.mxu2 %v567_v29 }
  0x1f   :  { %593 = vmatpush.msra.mxu1 %v566_v31 }
  0x20   :  { %2162 = vmatpush.msrb.mxu3 %v570_v26  ;;  %2169 = vmatpush.msra.mxu2 %v566_v31 }
  0x21   :  { %2077 = vmatmul.msk.f32.gmra.mxu0 %vm96_vm0, %v22_v10  ;;  %594 = vmatpush.msra.mxu1 %v565_v32  ;;  %v44_v10 = vld [vmem:[%s3416_s0 + $0xc0] sm:$0xff] }
  0x22   :  { %2164 = vmatpush.msrb.mxu3 %v569_v27  ;;  %2171 = vmatpush.msra.mxu2 %v565_v32 }
  0x23   :  { %595 = vmatpush.msra.mxu1 %v564_v33 }
  0x24   :  { %2166 = vmatpush.msrb.mxu3 %v568_v28  ;;  %2173 = vmatpush.msra.mxu2 %v564_v33  ;;  %v56_v28 = vld [vmem:[%s3416_s0 + $0x120] sm:$0xff] }
  0x25   :  { %596 = vmatpush.msra.mxu1 %v563_v35 }
  0x26   :  { %2168 = vmatpush.msrb.mxu3 %v567_v29  ;;  %2175 = vmatpush.msra.mxu2 %v563_v35 }
  0x27   :  { %597 = vmatpush.msra.mxu1 %v562_v36 }
  0x28   :  { %2170 = vmatpush.msrb.mxu3 %v566_v31  ;;  %2177 = vmatpush.msra.mxu2 %v562_v36 }
  0x29   :  { %2078 = vmatmul.msk.f32.gmra.mxu0 %vm96_vm0, %v23_v11 }
  0x2a   :  { %2172 = vmatpush.msrb.mxu3 %v565_v32 }
  0x2c   :  { %2174 = vmatpush.msrb.mxu3 %v564_v33  ;;  %v57_v33 = vld [vmem:[%s3416_s0 + $0x128] sm:$0xff] }
  0x2e   :  { %2176 = vmatpush.msrb.mxu3 %v563_v35  ;;  %v49_v35 = vld [vmem:[%s3416_s0 + $0xe8] sm:$0xff] }
  0x30   :  { %2178 = vmatpush.msrb.mxu3 %v562_v36 }
  0x31   :  { %2079 = vmatmul.msk.f32.gmra.mxu0 %vm96_vm0, %v24_v12 }
  0x39   :  { %2080 = vmatmul.msk.f32.gmra.mxu0 %vm96_vm0, %v25_v13  ;;  %v53_v13 = vld [vmem:[%s3416_s0 + $0x108] sm:$0xff] }
  0x3a   :  { %2108 = vmatmul.msk.f32.vlgmr.msra.gmra.mxu3 %vm96_vm0, %v53_v13 }
  0x41   :  { %2081 = vmatmul.msk.f32.gmra.mxu0 %vm96_vm0, %v26_v14 }
  0x42   :  { %2109 = vmatmul.msk.f32.gmra.mxu3 %vm96_vm0, %v54_v18 }
  0x49   :  { %2082 = vmatmul.msk.f32.gmra.mxu0 %vm96_vm0, %v27_v15  ;;  %v45_v15 = vld [vmem:[%s3416_s0 + $0xc8] sm:$0xff] }
  0x4a   :  { %2110 = vmatmul.msk.f32.gmra.mxu3 %vm96_vm0, %v55_v23 }
  0x51   :  { %2083 = vmatmul.msk.f32.gmra.mxu0 %vm96_vm0, %v28_v16 }
  0x52   :  { %2111 = vmatmul.msk.f32.gmra.mxu3 %vm96_vm0, %v56_v28 }
  0x59   :  { %2084 = vmatmul.msk.f32.gmra.mxu0 %vm96_vm0, %v29_v20  ;;  %v46_v20 = vld [vmem:[%s3416_s0 + $0xd0] sm:$0xff] }
  0x5a   :  { %2112 = vmatmul.msk.f32.gmra.mxu3 %vm96_vm0, %v57_v33 }
  0x61   :  { %2085 = vmatmul.msk.f32.gmra.mxu0 %vm96_vm0, %v30_v25  ;;  %v47_v25 = vld [vmem:[%s3416_s0 + $0xd8] sm:$0xff] }
  0x69   :  { %2086 = vmatmul.msk.f32.gmra.mxu0 %vm96_vm0, %v31_v30  ;;  %v48_v30 = vld [vmem:[%s3416_s0 + $0xe0] sm:$0xff] }
  0x71   :  { %2087 = vmatmul.msk.f32.gmra.mxu0 %vm96_vm0, %v32_v34 }
  0x79   :  { %2088 = vmatmul.msk.f32.gmra.mxu0 %vm96_vm0, %v33_v37 }
  0x81   :  { %2089 = vmatmul.msk.f32.gmra.mxu0 %vm96_vm0, %v34_v38  ;;  %v58_v38 = vld [vmem:[%s3416_s0 + $0x130] sm:$0xff] }
  0x82   :  { %2113 = vmatmul.msk.f32.gmra.mxu3 %vm96_vm0, %v58_v38 }
  0x89   :  { %2090 = vmatmul.msk.f32.gmra.mxu0 %vm96_vm0, %v35_v39 }
  0x8e   :  { %v306_v41 = vpop.f32.mrf.mxu0 }
  0x8f   :  { %v307_v43 = vadd.f32 %v2611_v40, %v306_v41  ;;  %v50_v41 = vld [vmem:[%s3416_s0 + $0xf0] sm:$0xff] }
  0x91   :  { %2091 = vmatmul.msk.f32.gmra.mxu0 %vm96_vm0, %v36_v42  ;;  %v498_v44 = vmax.f32 %v307_v43, 0.0 }
  0x93   :  { %598 = vmatmul.f32.vlgmr.msra.gmra.mxu1 %v498_v44 }
  0x96   :  { %v309_v45 = vpop.f32.mrf.mxu0 }
  0x97   :  { %v310_v47 = vadd.f32 %v2611_v40, %v309_v45  ;;  %v51_v45 = vld [vmem:[%s3416_s0 + $0xf8] sm:$0xff] }
  0x99   :  { %2092 = vmatmul.msk.f32.gmra.mxu0 %vm96_vm0, %v37_v46  ;;  %v499_v48 = vmax.f32 %v310_v47, 0.0  ;;  %v59_v46 = vld [vmem:[%s3416_s0 + $0x138] sm:$0xff] }
  0x9a   :  { %2114 = vmatmul.msk.f32.gmra.mxu3 %vm96_vm0, %v59_v46 }
  0x9b   :  { %601 = vmatmul.f32.gmra.mxu1 %v499_v48 }
  0x9e   :  { %v312_v49 = vpop.f32.mrf.mxu0 }
  0x9f   :  { %v313_v51 = vadd.f32 %v2611_v40, %v312_v49  ;;  %v2724_v49 = vld [vmem:[%s3418_s4] ss:$0 sm:$0xff] }
  0xa1   :  { %2093 = vmatmul.msk.f32.gmra.mxu0 %vm96_vm0, %v38_v50  ;;  %v500_v52 = vmax.f32 %v313_v51, 0.0  ;;  %v52_v51 = vld [vmem:[%s3416_s0 + $0x100] sm:$0xff] }
  0xa3   :  { %604 = vmatmul.f32.gmra.mxu1 %v500_v52 }
  0xa6   :  { %v315_v53 = vpop.f32.mrf.mxu0 }
  0xa7   :  { %v316_v55 = vadd.f32 %v2611_v40, %v315_v53  ;;  %v60_v53 = vld [vmem:[%s3416_s0 + $0x140] sm:$0xff] }
  0xa8   :  { %2115 = vmatmul.msk.f32.gmra.mxu3 %vm96_vm0, %v60_v53 }
  0xa9   :  { %2094 = vmatmul.msk.f32.gmra.mxu0 %vm96_vm0, %v39_v54  ;;  %v501_v56 = vmax.f32 %v316_v55, 0.0 }
  0xab   :  { %607 = vmatmul.f32.gmra.mxu1 %v501_v56 }
  0xae   :  { %v318_v57 = vpop.f32.mrf.mxu0 }
  0xaf   :  { %v319_v59 = vadd.f32 %v2611_v40, %v318_v57 }
  0xb1   :  { %2095 = vmatmul.msk.f32.gmra.mxu0 %vm96_vm0, %v40_v58  ;;  %v502_v60 = vmax.f32 %v319_v59, 0.0 }
  0xb3   :  { %610 = vmatmul.f32.gmra.mxu1 %v502_v60 }
  0xb6   :  { %v321_v61 = vpop.f32.mrf.mxu0 }
  0xb7   :  { %v322_v63 = vadd.f32 %v2611_v40, %v321_v61  ;;  %v61_v61 = vld [vmem:[%s3416_s0 + $0x148] sm:$0xff] }
  0xb8   :  { %2116 = vmatmul.msk.f32.gmra.mxu3 %vm96_vm0, %v61_v61 }
  0xb9   :  { %2096 = vmatmul.msk.f32.gmra.mxu0 %vm96_vm0, %v41_v62  ;;  %v503_v0 = vmax.f32 %v322_v63, 0.0 }
  0xbb   :  { %613 = vmatmul.f32.gmra.mxu1 %v503_v0 }
  0xbe   :  { %v324_v1 = vpop.f32.mrf.mxu0 }
  0xbf   :  { %v325_v3 = vadd.f32 %v2611_v40, %v324_v1 }
  0xc1   :  { %2097 = vmatmul.msk.f32.gmra.mxu0 %vm96_vm0, %v42_v2  ;;  %v504_v4 = vmax.f32 %v325_v3, 0.0 }
  0xc3   :  { %616 = vmatmul.f32.gmra.mxu1 %v504_v4 }
  0xc6   :  { %v327_v5 = vpop.f32.mrf.mxu0 }
  0xc7   :  { %v328_v7 = vadd.f32 %v2611_v40, %v327_v5 }
  0xc9   :  { %2098 = vmatmul.msk.f32.gmra.mxu0 %vm96_vm0, %v43_v6  ;;  %v505_v8 = vmax.f32 %v328_v7, 0.0  ;;  %v62_v7 = vld [vmem:[%s3416_s0 + $0x150] sm:$0xff] }
  0xca   :  { %2117 = vmatmul.msk.f32.gmra.mxu3 %vm96_vm0, %v62_v7 }
  0xcb   :  { %619 = vmatmul.f32.gmra.mxu1 %v505_v8 }
  0xce   :  { %v330_v9 = vpop.f32.mrf.mxu0 }
  0xcf   :  { %v331_v11 = vadd.f32 %v2611_v40, %v330_v9 }
  0xd1   :  { %2099 = vmatmul.msk.f32.gmra.mxu0 %vm96_vm0, %v44_v10  ;;  %v506_v12 = vmax.f32 %v331_v11, 0.0 }
  0xd3   :  { %622 = vmatmul.f32.gmra.mxu1 %v506_v12 }
  0xd6   :  { %v333_v14 = vpop.f32.mrf.mxu0 }
  0xd7   :  { %v334_v16 = vadd.f32 %v2611_v40, %v333_v14 }
  0xd9   :  { %v507_v17 = vmax.f32 %v334_v16, 0.0  ;;  %2100 = vmatmul.msk.f32.gmra.mxu0 %vm96_vm0, %v45_v15 }
  0xdb   :  { %625 = vmatmul.f32.gmra.mxu1 %v507_v17 }
  0xde   :  { %v336_v19 = vpop.f32.mrf.mxu0 }
  0xdf   :  { %v337_v21 = vadd.f32 %v2611_v40, %v336_v19  ;;  %v63_v19 = vld [vmem:[%s3416_s0 + $0x158] sm:$0xff] }
  0xe0   :  { %2118 = vmatmul.msk.f32.gmra.mxu3 %vm96_vm0, %v63_v19 }
  0xe1   :  { %v508_v22 = vmax.f32 %v337_v21, 0.0  ;;  %2101 = vmatmul.msk.f32.gmra.mxu0 %vm96_vm0, %v46_v20 }
  0xe3   :  { %628 = vmatmul.f32.gmra.mxu1 %v508_v22 }
  0xe6   :  { %v339_v24 = vpop.f32.mrf.mxu0 }
  0xe7   :  { %v340_v26 = vadd.f32 %v2611_v40, %v339_v24 }
  0xe9   :  { %v509_v27 = vmax.f32 %v340_v26, 0.0  ;;  %2102 = vmatmul.msk.f32.gmra.mxu0 %vm96_vm0, %v47_v25 }
  0xeb   :  { %631 = vmatmul.f32.gmra.mxu1 %v509_v27 }
  0xee   :  { %v342_v29 = vpop.f32.mrf.mxu0 }
  0xef   :  { %v343_v31 = vadd.f32 %v2611_v40, %v342_v29 }
  0xf1   :  { %v510_v32 = vmax.f32 %v343_v31, 0.0  ;;  %2103 = vmatmul.msk.f32.gmra.mxu0 %vm96_vm0, %v48_v30 }
  0xf3   :  { %634 = vmatmul.f32.gmra.mxu1 %v510_v32 }
  0xf6   :  { %v345_v34 = vpop.f32.mrf.mxu0 }
  0xf7   :  { %v346_v36 = vadd.f32 %v2611_v40, %v345_v34 }
  0xf9   :  { %v511_v37 = vmax.f32 %v346_v36, 0.0  ;;  %2104 = vmatmul.msk.f32.gmra.mxu0 %vm96_vm0, %v49_v35 }
  0xfb   :  { %637 = vmatmul.f32.gmra.mxu1 %v511_v37  ;;  %v64_v37 = vld [vmem:[%s3416_s0 + $0x160] sm:$0xff] }
  0xfc   :  { %2119 = vmatmul.msk.f32.gmra.mxu3 %vm96_vm0, %v64_v37 }
  0xfe   :  { %v348_v39 = vpop.f32.mrf.mxu0 }
  0xff   :  { %v349_v42 = vadd.f32 %v2611_v40, %v348_v39 }
 0x101   :  { %v512_v43 = vmax.f32 %v349_v42, 0.0  ;;  %2105 = vmatmul.msk.f32.gmra.mxu0 %vm96_vm0, %v50_v41 }
 0x103   :  { %640 = vmatmul.f32.gmra.mxu1 %v512_v43 }
 0x106   :  { %v351_v44 = vpop.f32.mrf.mxu0 }
 0x107   :  { %v352_v47 = vadd.f32 %v2611_v40, %v351_v44 }
 0x109   :  { %v513_v48 = vmax.f32 %v352_v47, 0.0  ;;  %2106 = vmatmul.msk.f32.gmra.mxu0 %vm96_vm0, %v51_v45 }
 0x10b   :  { %643 = vmatmul.f32.gmra.mxu1 %v513_v48 }
 0x10e   :  { %v354_v50 = vpop.f32.mrf.mxu0 }
 0x10f   :  { %v355_v52 = vadd.f32 %v2611_v40, %v354_v50 }
 0x110   :  { %v599_v54 = vpop.f32.mrf.mxu1 }
 0x111   :  { %v514_v55 = vmax.f32 %v355_v52, 0.0  ;;  %v600_v56 = vadd.f32 %v2724_v49, %v599_v54  ;;  %2107 = vmatmul.msk.f32.gmra.mxu0 %vm96_vm0, %v52_v51 }
 0x113   :  { %v791_v57 = vsub.f32 0.0, %v600_v56  ;;  %646 = vmatmul.f32.gmra.mxu1 %v514_v55 }
 0x115   :  { %v855_v58 = vmul.f32 1.442695, %v791_v57 }
 0x116   :  { %v357_v59 = vpop.f32.mrf.mxu0 }
 0x117   :  { %2181 = vpow2.f32 %v855_v58  ;;  %v358_v60 = vadd.f32 %v2611_v40, %v357_v59  ;;  %v65_v59 = vld [vmem:[%s3416_s0 + $0x168] sm:$0xff] }
 0x118   :  { %v602_v62 = vpop.f32.mrf.mxu1  ;;  %2120 = vmatmul.msk.f32.gmra.mxu3 %vm96_vm0, %v65_v59 }
 0x119   :  { %v515_v63 = vmax.f32 %v358_v60, 0.0  ;;  %v603_v0 = vadd.f32 %v2724_v49, %v602_v62 }
 0x11b   :  { %v792_v1 = vsub.f32 0.0, %v603_v0  ;;  %649 = vmatmul.f32.gmra.mxu1 %v515_v63 }
 0x11d   :  { %v2182_v2 = vpop.eup %2181  ;;  %v857_v3 = vmul.f32 1.442695, %v792_v1 }
 0x11e   :  { %v983_v4 = vadd.f32 1.0, %v2182_v2  ;;  %v360_v5 = vpop.f32.mrf.mxu0 }
 0x11f   :  { %2183 = vpow2.f32 %v857_v3  ;;  %v361_v6 = vadd.f32 %v2611_v40, %v360_v5 }
 0x120   :  { %2185 = vrcp.f32 %v983_v4  ;;  %v605_v8 = vpop.f32.mrf.mxu1  ;;  %v1058_v24 = vand.u32 2147483648, %v983_v4  ;;  %v1056_v26 = vand.u32 2147483647, %v983_v4  ;;  %vm1052_vm2 = vweird.f32 %v983_v4 }
 0x121   :  { %v516_v9 = vmax.f32 %v361_v6, 0.0  ;;  %v606_v10 = vadd.f32 %v2724_v49, %v605_v8 }
 0x122   :  { %v1059_v32 = vor.u32 1.1754944e-38, %v1058_v24  ;;  %vm1057_vm4 = vcmp.eq.f32.partialorder %v1056_v26, 8.507059e+37 }
 0x123   :  { %v793_v11 = vsub.f32 0.0, %v606_v10  ;;  %652 = vmatmul.f32.gmra.mxu1 %v516_v9 }
 0x125   :  { %v2184_v12 = vpop.eup %2183  ;;  %v859_v13 = vmul.f32 1.442695, %v793_v11 }
 0x126   :  { %v2186_v14 = vpop.eup %2185  ;;  %v984_v15 = vadd.f32 1.0, %v2184_v12  ;;  %v363_v16 = vpop.f32.mrf.mxu0 }
 0x127   :  { %v1048_v17 = vmul.f32 %v2186_v14, %v983_v4  ;;  %2187 = vpow2.f32 %v859_v13  ;;  %v364_v18 = vadd.f32 %v2611_v40, %v363_v16  ;;  %vm1053_vm1 = vweird.f32 %v2186_v14 }
 0x128   :  { %2189 = vrcp.f32 %v984_v15  ;;  %v608_v20 = vpop.f32.mrf.mxu1  ;;  %vm1054_vm3 = vmor %vm1052_vm2, %vm1053_vm1  ;;  %v1071_v44 = vand.u32 2147483647, %v984_v15  ;;  %v1073_v45 = vand.u32 2147483648, %v984_v15  ;;  %vm1067_vm6 = vweird.f32 %v984_v15 }
 0x129   :  { %v1049_v21 = vsub.f32 1.0, %v1048_v17  ;;  %v517_v22 = vmax.f32 %v364_v18, 0.0  ;;  %v609_v23 = vadd.f32 %v2724_v49, %v608_v20 }
 0x12a   :  { %v1074_v54 = vor.u32 1.1754944e-38, %v1073_v45  ;;  %vm1072_vm8 = vcmp.eq.f32.partialorder %v1071_v44, 8.507059e+37 }
 0x12b   :  { %v1050_v25 = vmul.f32 %v2186_v14, %v1049_v21  ;;  %v794_v27 = vsub.f32 0.0, %v609_v23  ;;  %655 = vmatmul.f32.gmra.mxu1 %v517_v22 }
 0x12d   :  { %v2188_v28 = vpop.eup %2187  ;;  %v1051_v29 = vadd.f32 %v2186_v14, %v1050_v25  ;;  %v861_v30 = vmul.f32 1.442695, %v794_v27 }
 0x12e   :  { %v2190_v31 = vpop.eup %2189  ;;  %v985_v33 = vadd.f32 1.0, %v2188_v28  ;;  %v366_v34 = vpop.f32.mrf.mxu0 }
 0x12f   :  { %v1055_v35 = vsel %vm1054_vm3, %v2186_v14, %v1051_v29  ;;  %v1063_v36 = vmul.f32 %v2190_v31, %v984_v15  ;;  %2191 = vpow2.f32 %v861_v30  ;;  %v367_v42 = vadd.f32 %v2611_v40, %v366_v34  ;;  %v66_v15 = vld [vmem:[%s3416_s0 + $0x170] sm:$0xff] }
 0x130   :  { %v1060_v38 = vsel %vm1057_vm4, %v1059_v32, %v1055_v35  ;;  %2193 = vrcp.f32 %v985_v33  ;;  %v611_v39 = vpop.f32.mrf.mxu1  ;;  %vm1068_vm5 = vweird.f32 %v2190_v31  ;;  %v1086_v1 = vand.u32 2147483647, %v985_v33  ;;  %2121 = vmatmul.msk.f32.gmra.mxu3 %vm96_vm0, %v66_v15  ;;  %v67_v35 = vld [vmem:[%s3416_s0 + $0x178] sm:$0xff] }
 0x131   :  { %2007 = vst.msk [vmem:[%s3419_s5] sm:$0xff] %vm96_vm0, %v1060_v38  ;;  %v1064_v41 = vsub.f32 1.0, %v1063_v36  ;;  %v612_v43 = vadd.f32 %v2724_v49, %v611_v39  ;;  %v518_v47 = vmax.f32 %v367_v42, 0.0  ;;  %vm1069_vm7 = vmor %vm1067_vm6, %vm1068_vm5  ;;  %v1088_v2 = vand.u32 2147483648, %v985_v33 }
 0x132   :  { %vm1082_vm10 = vweird.f32 %v985_v33  ;;  %vm1087_vm12 = vcmp.eq.f32.partialorder %v1086_v1, 8.507059e+37 }
 0x133   :  { %v1065_v46 = vmul.f32 %v2190_v31, %v1064_v41  ;;  %v795_v48 = vsub.f32 0.0, %v612_v43  ;;  %658 = vmatmul.f32.gmra.mxu1 %v518_v47  ;;  %v1089_v10 = vor.u32 1.1754944e-38, %v1088_v2 }
 0x135   :  { %v2192_v50 = vpop.eup %2191  ;;  %v1066_v51 = vadd.f32 %v2190_v31, %v1065_v46  ;;  %v863_v52 = vmul.f32 1.442695, %v795_v48 }
 0x136   :  { %v2194_v53 = vpop.eup %2193  ;;  %v986_v55 = vadd.f32 1.0, %v2192_v50  ;;  %v369_v56 = vpop.f32.mrf.mxu0 }
 0x137   :  { %v1070_v57 = vsel %vm1069_vm7, %v2190_v31, %v1066_v51  ;;  %v1078_v58 = vmul.f32 %v2194_v53, %v985_v33  ;;  %2195 = vpow2.f32 %v863_v52  ;;  %v370_v63 = vadd.f32 %v2611_v40, %v369_v56 }
 0x138   :  { %v1075_v60 = vsel %vm1072_vm8, %v1074_v54, %v1070_v57  ;;  %2197 = vrcp.f32 %v986_v55  ;;  %v614_v61 = vpop.f32.mrf.mxu1  ;;  %vm1083_vm9 = vweird.f32 %v2194_v53  ;;  %v1101_v21 = vand.u32 2147483647, %v986_v55  ;;  %2122 = vmatmul.msk.f32.gmra.mxu3 %vm96_vm0, %v67_v35  ;;  %v68_v57 = vld [vmem:[%s3416_s0 + $0x180] sm:$0xff] }
 0x139   :  { %2008 = vst.msk [vmem:[%s3419_s5 + $0x8] sm:$0xff] %vm96_vm0, %v1075_v60  ;;  %v1079_v62 = vsub.f32 1.0, %v1078_v58  ;;  %v615_v0 = vadd.f32 %v2724_v49, %v614_v61  ;;  %v519_v4 = vmax.f32 %v370_v63, 0.0  ;;  %vm1084_vm11 = vmor %vm1082_vm10, %vm1083_vm9  ;;  %v1103_v22 = vand.u32 2147483648, %v986_v55 }
 0x13a   :  { %vm1097_vm14 = vweird.f32 %v986_v55  ;;  %vm1102_vm1 = vcmp.eq.f32.partialorder %v1101_v21, 8.507059e+37 }
 0x13b   :  { %v1080_v3 = vmul.f32 %v2194_v53, %v1079_v62  ;;  %v796_v5 = vsub.f32 0.0, %v615_v0  ;;  %661 = vmatmul.f32.gmra.mxu1 %v519_v4  ;;  %v1104_v30 = vor.u32 1.1754944e-38, %v1103_v22 }
 0x13d   :  { %v2196_v6 = vpop.eup %2195  ;;  %v1081_v7 = vadd.f32 %v2194_v53, %v1080_v3  ;;  %v865_v8 = vmul.f32 1.442695, %v796_v5 }
 0x13e   :  { %v2198_v9 = vpop.eup %2197  ;;  %v987_v11 = vadd.f32 1.0, %v2196_v6  ;;  %v372_v12 = vpop.f32.mrf.mxu0 }
 0x13f   :  { %v1085_v13 = vsel %vm1084_vm11, %v2194_v53, %v1081_v7  ;;  %v1093_v14 = vmul.f32 %v2198_v9, %v986_v55  ;;  %2199 = vpow2.f32 %v865_v8  ;;  %v373_v19 = vadd.f32 %v2611_v40, %v372_v12 }
 0x140   :  { %v1090_v16 = vsel %vm1087_vm12, %v1089_v10, %v1085_v13  ;;  %2201 = vrcp.f32 %v987_v11  ;;  %v617_v17 = vpop.f32.mrf.mxu1  ;;  %vm1098_vm13 = vweird.f32 %v2198_v9  ;;  %v1116_v42 = vand.u32 2147483647, %v987_v11  ;;  %2123 = vmatmul.msk.f32.gmra.mxu3 %vm96_vm0, %v68_v57  ;;  %v69_v13 = vld [vmem:[%s3416_s0 + $0x188] sm:$0xff]  ;;  %v71_v57 = vld [vmem:[%s3416_s0 + $0x198] sm:$0xff] }
 0x141   :  { %2009 = vst.msk [vmem:[%s3419_s5 + $0x10] sm:$0xff] %vm96_vm0, %v1090_v16  ;;  %v1094_v18 = vsub.f32 1.0, %v1093_v14  ;;  %v618_v20 = vadd.f32 %v2724_v49, %v617_v17  ;;  %v520_v24 = vmax.f32 %v373_v19, 0.0  ;;  %vm1099_vm15 = vmor %vm1097_vm14, %vm1098_vm13  ;;  %v1118_v43 = vand.u32 2147483648, %v987_v11 }
 0x142   :  { %vm1112_vm3 = vweird.f32 %v987_v11  ;;  %vm1117_vm5 = vcmp.eq.f32.partialorder %v1116_v42, 8.507059e+37 }
 0x143   :  { %v1095_v23 = vmul.f32 %v2198_v9, %v1094_v18  ;;  %v797_v25 = vsub.f32 0.0, %v618_v20  ;;  %664 = vmatmul.f32.gmra.mxu1 %v520_v24  ;;  %v1119_v52 = vor.u32 1.1754944e-38, %v1118_v43  ;;  %v2823_v24 = vpop.f32.mrf.mxu3 }
 0x145   :  { %v2200_v26 = vpop.eup %2199  ;;  %v1096_v27 = vadd.f32 %v2198_v9, %v1095_v23  ;;  %v867_v28 = vmul.f32 1.442695, %v797_v25 }
 0x146   :  { %v2202_v29 = vpop.eup %2201  ;;  %v988_v31 = vadd.f32 1.0, %v2200_v26  ;;  %v375_v32 = vpop.f32.mrf.mxu0 }
 0x147   :  { %v1100_v33 = vsel %vm1099_vm15, %v2198_v9, %v1096_v27  ;;  %v1108_v34 = vmul.f32 %v2202_v29, %v987_v11  ;;  %2203 = vpow2.f32 %v867_v28  ;;  %v376_v39 = vadd.f32 %v2611_v40, %v375_v32 }
 0x148   :  { %v1105_v36 = vsel %vm1102_vm1, %v1104_v30, %v1100_v33  ;;  %2205 = vrcp.f32 %v988_v31  ;;  %v620_v37 = vpop.f32.mrf.mxu1  ;;  %vm1113_vm2 = vweird.f32 %v2202_v29  ;;  %v1131_v63 = vand.u32 2147483647, %v988_v31  ;;  %2124 = vmatmul.msk.f32.gmra.mxu3 %vm96_vm0, %v69_v13 }
 0x149   :  { %2010 = vst.msk [vmem:[%s3419_s5 + $0x18] sm:$0xff] %vm96_vm0, %v1105_v36  ;;  %v1109_v38 = vsub.f32 1.0, %v1108_v34  ;;  %v621_v41 = vadd.f32 %v2724_v49, %v620_v37  ;;  %v521_v45 = vmax.f32 %v376_v39, 0.0  ;;  %vm1114_vm4 = vmor %vm1112_vm3, %vm1113_vm2  ;;  %v1133_v0 = vand.u32 2147483648, %v988_v31  ;;  %v70_v34 = vld [vmem:[%s3416_s0 + $0x190] sm:$0xff] }
 0x14a   :  { %vm1127_vm7 = vweird.f32 %v988_v31  ;;  %vm1132_vm9 = vcmp.eq.f32.partialorder %v1131_v63, 8.507059e+37 }
 0x14b   :  { %v1110_v44 = vmul.f32 %v2202_v29, %v1109_v38  ;;  %v798_v46 = vsub.f32 0.0, %v621_v41  ;;  %667 = vmatmul.f32.gmra.mxu1 %v521_v45  ;;  %v1134_v8 = vor.u32 1.1754944e-38, %v1133_v0 }
 0x14d   :  { %v2204_v47 = vpop.eup %2203  ;;  %v1111_v48 = vadd.f32 %v2202_v29, %v1110_v44  ;;  %v869_v50 = vmul.f32 1.442695, %v798_v46  ;;  %v2842_v46 = vpop.f32.mrf.mxu3 }
 0x14e   :  { %v2206_v51 = vpop.eup %2205  ;;  %v2794_v53 = vadd.f32 1.0, %v2204_v47  ;;  %v378_v54 = vpop.f32.mrf.mxu0 }
 0x14f   :  { %v1115_v55 = vsel %vm1114_vm4, %v2202_v29, %v1111_v48  ;;  %v1123_v56 = vmul.f32 %v2206_v51, %v988_v31  ;;  %2207 = vpow2.f32 %v869_v50  ;;  %v379_v61 = vadd.f32 %v2611_v40, %v378_v54 }
 0x150   :  { %v1120_v58 = vsel %vm1117_vm5, %v1119_v52, %v1115_v55  ;;  %2209 = vrcp.f32 %v2794_v53  ;;  %v623_v59 = vpop.f32.mrf.mxu1  ;;  %vm1128_vm6 = vweird.f32 %v2206_v51  ;;  %v1146_v19 = vand.u32 2147483647, %v2794_v53  ;;  %2125 = vmatmul.msk.f32.gmra.mxu3 %vm96_vm0, %v70_v34 }
 0x151   :  { %2011 = vst.msk [vmem:[%s3419_s5 + $0x20] sm:$0xff] %vm96_vm0, %v1120_v58  ;;  %v1124_v60 = vsub.f32 1.0, %v1123_v56  ;;  %v624_v62 = vadd.f32 %v2724_v49, %v623_v59  ;;  %v522_v2 = vmax.f32 %v379_v61, 0.0  ;;  %vm1129_vm8 = vmor %vm1127_vm7, %vm1128_vm6  ;;  %v1148_v20 = vand.u32 2147483648, %v2794_v53 }
 0x152   :  { %vm1142_vm11 = vweird.f32 %v2794_v53  ;;  %vm1147_vm13 = vcmp.eq.f32.partialorder %v1146_v19, 8.507059e+37 }
 0x153   :  { %v1125_v1 = vmul.f32 %v2206_v51, %v1124_v60  ;;  %v799_v3 = vsub.f32 0.0, %v624_v62  ;;  %670 = vmatmul.f32.gmra.mxu1 %v522_v2  ;;  %v1149_v29 = vor.u32 1.1754944e-38, %v1148_v20 }
 0x155   :  { %v2208_v4 = vpop.eup %2207  ;;  %v1126_v5 = vadd.f32 %v2206_v51, %v1125_v1  ;;  %v871_v6 = vmul.f32 1.442695, %v799_v3 }
 0x156   :  { %v2210_v7 = vpop.eup %2209  ;;  %v2807_v9 = vadd.f32 1.0, %v2208_v4  ;;  %v381_v10 = vpop.f32.mrf.mxu0 }
 0x157   :  { %v1130_v11 = vsel %vm1129_vm8, %v2206_v51, %v1126_v5  ;;  %v1138_v12 = vmul.f32 %v2210_v7, %v2794_v53  ;;  %2211 = vpow2.f32 %v871_v6  ;;  %v382_v17 = vadd.f32 %v2611_v40, %v381_v10  ;;  %v2861_v4 = vpop.f32.mrf.mxu3 }
 0x158   :  { %v1135_v14 = vsel %vm1132_vm9, %v1134_v8, %v1130_v11  ;;  %2213 = vrcp.f32 %v2807_v9  ;;  %v626_v15 = vpop.f32.mrf.mxu1  ;;  %vm1143_vm10 = vweird.f32 %v2210_v7  ;;  %v1161_v41 = vand.u32 2147483647, %v2807_v9  ;;  %2126 = vmatmul.msk.f32.gmra.mxu3 %vm96_vm0, %v71_v57 }
 0x159   :  { %2012 = vst.msk [vmem:[%s3419_s5 + $0x28] sm:$0xff] %vm96_vm0, %v1135_v14  ;;  %v1139_v16 = vsub.f32 1.0, %v1138_v12  ;;  %v627_v18 = vadd.f32 %v2724_v49, %v626_v15  ;;  %v523_v22 = vmax.f32 %v382_v17, 0.0  ;;  %vm1144_vm12 = vmor %vm1142_vm11, %vm1143_vm10  ;;  %v1163_v42 = vand.u32 2147483648, %v2807_v9  ;;  %v72_v14 = vld [vmem:[%s3416_s0 + $0x1a0] sm:$0xff] }
 0x15a   :  { %vm1157_vm15 = vweird.f32 %v2807_v9  ;;  %vm1162_vm2 = vcmp.eq.f32.partialorder %v1161_v41, 8.507059e+37 }
 0x15b   :  { %v1140_v21 = vmul.f32 %v2210_v7, %v1139_v16  ;;  %v800_v23 = vsub.f32 0.0, %v627_v18  ;;  %673 = vmatmul.f32.gmra.mxu1 %v523_v22  ;;  %v1164_v52 = vor.u32 1.1754944e-38, %v1163_v42 }
 0x15d   :  { %v2212_v25 = vpop.eup %2211  ;;  %v1141_v26 = vadd.f32 %v2210_v7, %v1140_v21  ;;  %v873_v27 = vmul.f32 1.442695, %v800_v23 }
 0x15e   :  { %v2214_v28 = vpop.eup %2213  ;;  %v2826_v30 = vadd.f32 1.0, %v2212_v25  ;;  %v384_v31 = vpop.f32.mrf.mxu0 }
 0x15f   :  { %v1145_v32 = vsel %vm1144_vm12, %v2210_v7, %v1141_v26  ;;  %v1153_v33 = vmul.f32 %v2214_v28, %v2807_v9  ;;  %2215 = vpow2.f32 %v873_v27  ;;  %v385_v38 = vadd.f32 %v2611_v40, %v384_v31  ;;  %v2880_v26 = vpop.f32.mrf.mxu3 }
 0x160   :  { %v1150_v35 = vsel %vm1147_vm13, %v1149_v29, %v1145_v32  ;;  %2217 = vrcp.f32 %v2826_v30  ;;  %v629_v36 = vpop.f32.mrf.mxu1  ;;  %vm1158_vm14 = vweird.f32 %v2214_v28  ;;  %v1176_v63 = vand.u32 2147483647, %v2826_v30  ;;  %2127 = vmatmul.msk.f32.gmra.mxu3 %vm96_vm0, %v72_v14 }
 0x161   :  { %2013 = vst.msk [vmem:[%s3419_s5 + $0x30] sm:$0xff] %vm96_vm0, %v1150_v35  ;;  %v1154_v37 = vsub.f32 1.0, %v1153_v33  ;;  %v630_v39 = vadd.f32 %v2724_v49, %v629_v36  ;;  %v524_v44 = vmax.f32 %v385_v38, 0.0  ;;  %vm1159_vm1 = vmor %vm1157_vm15, %vm1158_vm14  ;;  %v1178_v0 = vand.u32 2147483648, %v2826_v30  ;;  %v73_v36 = vld [vmem:[%s3416_s0 + $0x1a8] sm:$0xff] }
 0x162   :  { %vm1172_vm4 = vweird.f32 %v2826_v30  ;;  %vm1177_vm6 = vcmp.eq.f32.partialorder %v1176_v63, 8.507059e+37 }
 0x163   :  { %v1155_v43 = vmul.f32 %v2214_v28, %v1154_v37  ;;  %v801_v45 = vsub.f32 0.0, %v630_v39  ;;  %676 = vmatmul.f32.gmra.mxu1 %v524_v44  ;;  %v1179_v9 = vor.u32 1.1754944e-38, %v1178_v0 }
 0x165   :  { %v2216_v47 = vpop.eup %2215  ;;  %v1156_v48 = vadd.f32 %v2214_v28, %v1155_v43  ;;  %v875_v50 = vmul.f32 1.442695, %v801_v45 }
 0x166   :  { %v2218_v51 = vpop.eup %2217  ;;  %v2845_v53 = vadd.f32 1.0, %v2216_v47  ;;  %v387_v54 = vpop.f32.mrf.mxu0 }
 0x167   :  { %v1160_v55 = vsel %vm1159_vm1, %v2214_v28, %v1156_v48  ;;  %v1168_v56 = vmul.f32 %v2218_v51, %v2826_v30  ;;  %2219 = vpow2.f32 %v875_v50  ;;  %v388_v61 = vadd.f32 %v2611_v40, %v387_v54  ;;  %v2899_v50 = vpop.f32.mrf.mxu3 }
 0x168   :  { %v1165_v58 = vsel %vm1162_vm2, %v1164_v52, %v1160_v55  ;;  %2221 = vrcp.f32 %v2845_v53  ;;  %v632_v59 = vpop.f32.mrf.mxu1  ;;  %vm1173_vm3 = vweird.f32 %v2218_v51  ;;  %v1191_v20 = vand.u32 2147483647, %v2845_v53  ;;  %2128 = vmatmul.msk.f32.gmra.mxu3 %vm96_vm0, %v73_v36 }
 0x169   :  { %2014 = vst.msk [vmem:[%s3419_s5 + $0x38] sm:$0xff] %vm96_vm0, %v1165_v58  ;;  %v1169_v60 = vsub.f32 1.0, %v1168_v56  ;;  %v633_v62 = vadd.f32 %v2724_v49, %v632_v59  ;;  %v525_v2 = vmax.f32 %v388_v61, 0.0  ;;  %vm1174_vm5 = vmor %vm1172_vm4, %vm1173_vm3  ;;  %v1193_v21 = vand.u32 2147483648, %v2845_v53 }
 0x16a   :  { %vm1187_vm8 = vweird.f32 %v2845_v53  ;;  %vm1192_vm10 = vcmp.eq.f32.partialorder %v1191_v20, 8.507059e+37 }
 0x16b   :  { %v1170_v1 = vmul.f32 %v2218_v51, %v1169_v60  ;;  %v802_v3 = vsub.f32 0.0, %v633_v62  ;;  %679 = vmatmul.f32.gmra.mxu1 %v525_v2  ;;  %v1194_v31 = vor.u32 1.1754944e-38, %v1193_v21  ;;  %v74_v60 = vld [vmem:[%s3416_s0 + $0x1b0] sm:$0xff]  ;;  %v2936_v21 = vld [vmem:[%s3415_s2] ss:$0 sm:$0xff] }
 0x16d   :  { %v2220_v5 = vpop.eup %2219  ;;  %v1171_v6 = vadd.f32 %v2218_v51, %v1170_v1  ;;  %v877_v7 = vmul.f32 1.442695, %v802_v3 }
 0x16e   :  { %v2222_v8 = vpop.eup %2221  ;;  %v2864_v10 = vadd.f32 1.0, %v2220_v5  ;;  %v390_v11 = vpop.f32.mrf.mxu0 }
 0x16f   :  { %v1175_v12 = vsel %vm1174_vm5, %v2218_v51, %v1171_v6  ;;  %v1183_v13 = vmul.f32 %v2222_v8, %v2845_v53  ;;  %2223 = vpow2.f32 %v877_v7  ;;  %v391_v18 = vadd.f32 %v2611_v40, %v390_v11 }
 0x170   :  { %v1180_v15 = vsel %vm1177_vm6, %v1179_v9, %v1175_v12  ;;  %2225 = vrcp.f32 %v2864_v10  ;;  %v635_v16 = vpop.f32.mrf.mxu1  ;;  %vm1188_vm7 = vweird.f32 %v2222_v8  ;;  %v1206_v43 = vand.u32 2147483647, %v2864_v10  ;;  %2129 = vmatmul.msk.f32.gmra.mxu3 %vm96_vm0, %v74_v60 }
 0x171   :  { %2015 = vst.msk [vmem:[%s3419_s5 + $0x40] sm:$0xff] %vm96_vm0, %v1180_v15  ;;  %v1184_v17 = vsub.f32 1.0, %v1183_v13  ;;  %v636_v19 = vadd.f32 %v2724_v49, %v635_v16  ;;  %v526_v23 = vmax.f32 %v391_v18, 0.0  ;;  %vm1189_vm9 = vmor %vm1187_vm8, %vm1188_vm7  ;;  %v1208_v44 = vand.u32 2147483648, %v2864_v10 }
 0x172   :  { %vm1202_vm12 = vweird.f32 %v2864_v10  ;;  %vm1207_vm14 = vcmp.eq.f32.partialorder %v1206_v43, 8.507059e+37 }
 0x173   :  { %v1185_v22 = vmul.f32 %v2222_v8, %v1184_v17  ;;  %v803_v25 = vsub.f32 0.0, %v636_v19  ;;  %682 = vmatmul.f32.gmra.mxu1 %v526_v23  ;;  %v1209_v55 = vor.u32 1.1754944e-38, %v1208_v44  ;;  %v75_v17 = vld [vmem:[%s3416_s0 + $0x1b8] sm:$0xff] }
 0x175   :  { %v2224_v27 = vpop.eup %2223  ;;  %v1186_v28 = vadd.f32 %v2222_v8, %v1185_v22  ;;  %v879_v29 = vmul.f32 1.442695, %v803_v25 }
 0x176   :  { %v2226_v30 = vpop.eup %2225  ;;  %v2883_v32 = vadd.f32 1.0, %v2224_v27  ;;  %v393_v33 = vpop.f32.mrf.mxu0 }
 0x177   :  { %v1190_v34 = vsel %vm1189_vm9, %v2222_v8, %v1186_v28  ;;  %v1198_v35 = vmul.f32 %v2226_v30, %v2864_v10  ;;  %2227 = vpow2.f32 %v879_v29  ;;  %v394_v41 = vadd.f32 %v2611_v40, %v393_v33  ;;  %v2918_v8 = vpop.f32.mrf.mxu3 }
 0x178   :  { %v1195_v37 = vsel %vm1192_vm10, %v1194_v31, %v1190_v34  ;;  %2229 = vrcp.f32 %v2883_v32  ;;  %v638_v38 = vpop.f32.mrf.mxu1  ;;  %vm1203_vm11 = vweird.f32 %v2226_v30  ;;  %v1221_v2 = vand.u32 2147483647, %v2883_v32  ;;  %2130 = vmatmul.msk.f32.gmra.mxu3 %vm96_vm0, %v75_v17 }
 0x179   :  { %2016 = vst.msk [vmem:[%s3419_s5 + $0x48] sm:$0xff] %vm96_vm0, %v1195_v37  ;;  %v1199_v39 = vsub.f32 1.0, %v1198_v35  ;;  %v639_v42 = vadd.f32 %v2724_v49, %v638_v38  ;;  %v527_v47 = vmax.f32 %v394_v41, 0.0  ;;  %vm1204_vm13 = vmor %vm1202_vm12, %vm1203_vm11  ;;  %v1223_v3 = vand.u32 2147483648, %v2883_v32 }
 0x17a   :  { %vm1217_vm1 = vweird.f32 %v2883_v32  ;;  %vm1222_vm3 = vcmp.eq.f32.partialorder %v1221_v2, 8.507059e+37  ;;  %v77_v2 = vld [vmem:[%s3416_s0 + $0x1c8] sm:$0xff] }
 0x17b   :  { %v1200_v45 = vmul.f32 %v2226_v30, %v1199_v39  ;;  %v804_v48 = vsub.f32 0.0, %v639_v42  ;;  %685 = vmatmul.f32.gmra.mxu1 %v527_v47  ;;  %v76_v42 = vld [vmem:[%s3416_s0 + $0x1c0] sm:$0xff] }
 0x17d   :  { %v2228_v51 = vpop.eup %2227  ;;  %v1201_v52 = vadd.f32 %v2226_v30, %v1200_v45  ;;  %v881_v53 = vmul.f32 1.442695, %v804_v48 }
 0x17e   :  { %v2230_v54 = vpop.eup %2229  ;;  %v2902_v56 = vadd.f32 1.0, %v2228_v51  ;;  %v396_v57 = vpop.f32.mrf.mxu0 }
 0x17f   :  { %v1205_v58 = vsel %vm1204_vm13, %v2226_v30, %v1201_v52  ;;  %v1213_v59 = vmul.f32 %v2230_v54, %v2883_v32  ;;  %2231 = vpow2.f32 %v881_v53  ;;  %v397_v0 = vadd.f32 %v2611_v40, %v396_v57  ;;  %v2942_v31 = vpop.f32.mrf.mxu3 }
 0x180   :  { %v1210_v61 = vsel %vm1207_vm14, %v1209_v55, %v1205_v58  ;;  %2233 = vrcp.f32 %v2902_v56  ;;  %v641_v62 = vpop.f32.mrf.mxu1  ;;  %vm1218_vm15 = vweird.f32 %v2230_v54  ;;  %v1224_v40 = vor.u32 1.1754944e-38, %v1223_v3  ;;  %2131 = vmatmul.msk.f32.gmra.mxu3 %vm96_vm0, %v76_v42 }
 0x181   :  { %2017 = vst.msk [vmem:[%s3419_s5 + $0x50] sm:$0xff] %vm96_vm0, %v1210_v61  ;;  %v1214_v63 = vsub.f32 1.0, %v1213_v59  ;;  %v642_v1 = vadd.f32 %v2724_v49, %v641_v62  ;;  %v528_v6 = vmax.f32 %v397_v0, 0.0  ;;  %vm1219_vm2 = vmor %vm1217_vm1, %vm1218_vm15  ;;  %v1236_v25 = vand.u32 2147483647, %v2902_v56 }
 0x182   :  { %v1238_v27 = vand.u32 2147483648, %v2902_v56  ;;  %vm1232_vm5 = vweird.f32 %v2902_v56  ;;  %v406_v62 = vadd.f32 %v2936_v21, %v2823_v24  ;;  %v412_v42 = vadd.f32 %v2936_v21, %v2861_v4  ;;  %v3006_v4 = vld [vmem:[%s3418_s4] ss:$0 sm:$0xff] }
 0x183   :  { %v1215_v5 = vmul.f32 %v2230_v54, %v1214_v63  ;;  %v805_v7 = vsub.f32 0.0, %v642_v1  ;;  %688 = vmatmul.f32.gmra.mxu1 %v528_v6  ;;  %vm1237_vm7 = vcmp.eq.f32.partialorder %v1236_v25, 8.507059e+37 }
 0x184   :  { %v1239_v36 = vor.u32 1.1754944e-38, %v1238_v27 }
 0x185   :  { %v2232_v9 = vpop.eup %2231  ;;  %v1216_v10 = vadd.f32 %v2230_v54, %v1215_v5  ;;  %v883_v11 = vmul.f32 1.442695, %v805_v7 }
 0x186   :  { %v2234_v12 = vpop.eup %2233  ;;  %v2921_v13 = vadd.f32 1.0, %v2232_v9  ;;  %v399_v14 = vpop.f32.mrf.mxu0  ;;  %v531_v9 = vmax.f32 %v406_v62, 0.0 }
 0x187   :  { %v1220_v15 = vsel %vm1219_vm2, %v2230_v54, %v1216_v10  ;;  %v1228_v16 = vmul.f32 %v2234_v12, %v2902_v56  ;;  %2235 = vpow2.f32 %v883_v11  ;;  %v400_v22 = vadd.f32 %v2936_v21, %v399_v14  ;;  %v2961_v56 = vpop.f32.mrf.mxu3 }
 0x188   :  { %v1225_v18 = vsel %vm1222_vm3, %v1224_v40, %v1220_v15  ;;  %2237 = vrcp.f32 %v2921_v13  ;;  %v644_v19 = vpop.f32.mrf.mxu1  ;;  %vm1233_vm4 = vweird.f32 %v2234_v12  ;;  %v1251_v51 = vand.u32 2147483647, %v2921_v13  ;;  %2132 = vmatmul.msk.f32.gmra.mxu3 %vm96_vm0, %v77_v2 }
 0x189   :  { %2018 = vst.msk [vmem:[%s3419_s5 + $0x58] sm:$0xff] %vm96_vm0, %v1225_v18  ;;  %v1229_v20 = vsub.f32 1.0, %v1228_v16  ;;  %v645_v23 = vadd.f32 %v2724_v49, %v644_v19  ;;  %v529_v29 = vmax.f32 %v400_v22, 0.0  ;;  %vm1234_vm6 = vmor %vm1232_vm5, %vm1233_vm4  ;;  %v1253_v52 = vand.u32 2147483648, %v2921_v13 }
 0x18a   :  { %vm1247_vm9 = vweird.f32 %v2921_v13  ;;  %vm1252_vm11 = vcmp.eq.f32.partialorder %v1251_v51, 8.507059e+37  ;;  %v409_v18 = vadd.f32 %v2936_v21, %v2842_v46 }
 0x18b   :  { %v1230_v28 = vmul.f32 %v2234_v12, %v1229_v20  ;;  %v806_v30 = vsub.f32 0.0, %v645_v23  ;;  %691 = vmatmul.f32.vlgmr.msra.gmra.mxu2 %v529_v29  ;;  %v1254_v61 = vor.u32 1.1754944e-38, %v1253_v52  ;;  %v78_v23 = vld [vmem:[%s3416_s0 + $0x1d0] sm:$0xff] }
 0x18d   :  { %v2236_v32 = vpop.eup %2235  ;;  %v1231_v33 = vadd.f32 %v2234_v12, %v1230_v28  ;;  %v885_v34 = vmul.f32 1.442695, %v806_v30  ;;  %v532_v30 = vmax.f32 %v409_v18, 0.0 }
 0x18e   :  { %v2238_v35 = vpop.eup %2237  ;;  %v2945_v37 = vadd.f32 1.0, %v2236_v32  ;;  %v402_v38 = vpop.f32.mrf.mxu0 }
 0x18f   :  { %v1235_v39 = vsel %vm1234_vm6, %v2234_v12, %v1231_v33  ;;  %v1243_v41 = vmul.f32 %v2238_v35, %v2921_v13  ;;  %2239 = vpow2.f32 %v885_v34  ;;  %v403_v47 = vadd.f32 %v2936_v21, %v402_v38  ;;  %v2978_v40 = vpop.f32.mrf.mxu3 }
 0x190   :  { %v1240_v43 = vsel %vm1237_vm7, %v1239_v36, %v1235_v39  ;;  %2241 = vrcp.f32 %v2945_v37  ;;  %v647_v44 = vpop.f32.mrf.mxu1  ;;  %vm1248_vm8 = vweird.f32 %v2238_v35  ;;  %v1268_v7 = vand.u32 2147483648, %v2945_v37  ;;  %2133 = vmatmul.msk.f32.gmra.mxu3 %vm96_vm0, %v78_v23 }
 0x191   :  { %2019 = vst.msk [vmem:[%s3419_s5 + $0x60] sm:$0xff] %vm96_vm0, %v1240_v43  ;;  %v1244_v45 = vsub.f32 1.0, %v1243_v41  ;;  %v648_v48 = vadd.f32 %v2724_v49, %v647_v44  ;;  %v530_v54 = vmax.f32 %v403_v47, 0.0  ;;  %vm1249_vm10 = vmor %vm1247_vm9, %vm1248_vm8  ;;  %v1266_v11 = vand.u32 2147483647, %v2945_v37 }
 0x192   :  { %vm1262_vm13 = vweird.f32 %v2945_v37  ;;  %v1269_v17 = vor.u32 1.1754944e-38, %v1268_v7 }
 0x193   :  { %v1245_v53 = vmul.f32 %v2238_v35, %v1244_v45  ;;  %v807_v55 = vsub.f32 0.0, %v648_v48  ;;  %694 = vmatmul.f32.gmra.mxu2 %v530_v54  ;;  %vm1267_vm15 = vcmp.eq.f32.partialorder %v1266_v11, 8.507059e+37  ;;  %v79_v48 = vld [vmem:[%s3416_s0 + $0x1d8] sm:$0xff]  ;;  %v533_v54 = vmax.f32 %v412_v42, 0.0 }
 0x195   :  { %v2240_v57 = vpop.eup %2239  ;;  %v1246_v58 = vadd.f32 %v2238_v35, %v1245_v53  ;;  %v887_v59 = vmul.f32 1.442695, %v807_v55 }
 0x196   :  { %v2242_v60 = vpop.eup %2241  ;;  %v998_v63 = vadd.f32 1.0, %v2240_v57 }
 0x197   :  { %v1250_v0 = vsel %vm1249_vm10, %v2238_v35, %v1246_v58  ;;  %v1258_v1 = vmul.f32 %v2242_v60, %v2945_v37  ;;  %2243 = vpow2.f32 %v887_v59  ;;  %vm1263_vm12 = vweird.f32 %v2242_v60  ;;  %v2992_v35 = vpop.f32.mrf.mxu3 }
 0x198   :  { %v1255_v3 = vsel %vm1252_vm11, %v1254_v61, %v1250_v0  ;;  %2245 = vrcp.f32 %v998_v63  ;;  %v650_v5 = vpop.f32.mrf.mxu1  ;;  %vm1264_vm14 = vmor %vm1262_vm13, %vm1263_vm12  ;;  %v1283_v29 = vand.u32 2147483648, %v998_v63  ;;  %v1281_v33 = vand.u32 2147483647, %v998_v63  ;;  %2134 = vmatmul.msk.f32.gmra.mxu3 %vm96_vm0, %v79_v48 }
 0x199   :  { %2020 = vst.msk [vmem:[%s3419_s5 + $0x68] sm:$0xff] %vm96_vm0, %v1255_v3  ;;  %v1259_v24 = vsub.f32 1.0, %v1258_v1  ;;  %v651_v6 = vadd.f32 %v2724_v49, %v650_v5  ;;  %vm1277_vm2 = vweird.f32 %v998_v63  ;;  %v415_v1 = vadd.f32 %v2936_v21, %v2880_v26 }
 0x19a   :  { %v1284_v41 = vor.u32 1.1754944e-38, %v1283_v29  ;;  %vm1282_vm4 = vcmp.eq.f32.partialorder %v1281_v33, 8.507059e+37 }
 0x19b   :  { %v1260_v10 = vmul.f32 %v2242_v60, %v1259_v24  ;;  %v808_v12 = vsub.f32 0.0, %v651_v6  ;;  %697 = vmatmul.f32.gmra.mxu2 %v531_v9  ;;  %v80_v6 = vld [vmem:[%s3416_s0 + $0x1e0] sm:$0xff] }
 0x19d   :  { %v2244_v13 = vpop.eup %2243  ;;  %v1261_v14 = vadd.f32 %v2242_v60, %v1260_v10  ;;  %v889_v15 = vmul.f32 1.442695, %v808_v12  ;;  %v534_v10 = vmax.f32 %v415_v1, 0.0 }
 0x19e   :  { %v2246_v16 = vpop.eup %2245  ;;  %v999_v19 = vadd.f32 1.0, %v2244_v13 }
 0x19f   :  { %v1265_v20 = vsel %vm1264_vm14, %v2242_v60, %v1261_v14  ;;  %v1273_v22 = vmul.f32 %v2246_v16, %v998_v63  ;;  %2247 = vpow2.f32 %v889_v15  ;;  %vm1278_vm1 = vweird.f32 %v2246_v16  ;;  %v3010_v59 = vpop.f32.mrf.mxu3 }
 0x1a0   :  { %v1270_v25 = vsel %vm1267_vm15, %v1269_v17, %v1265_v20  ;;  %2249 = vrcp.f32 %v999_v19  ;;  %v653_v27 = vpop.f32.mrf.mxu1  ;;  %vm1279_vm3 = vmor %vm1277_vm2, %vm1278_vm1  ;;  %v1298_v53 = vand.u32 2147483648, %v999_v19  ;;  %v1296_v57 = vand.u32 2147483647, %v999_v19  ;;  %2135 = vmatmul.msk.f32.gmra.mxu3 %vm96_vm0, %v80_v6 }
 0x1a1   :  { %2021 = vst.msk [vmem:[%s3419_s5 + $0x70] sm:$0xff] %vm96_vm0, %v1270_v25  ;;  %v1274_v46 = vsub.f32 1.0, %v1273_v22  ;;  %v654_v28 = vadd.f32 %v2724_v49, %v653_v27  ;;  %vm1292_vm6 = vweird.f32 %v999_v19  ;;  %v418_v20 = vadd.f32 %v2936_v21, %v2899_v50 }
 0x1a2   :  { %v1299_v0 = vor.u32 1.1754944e-38, %v1298_v53  ;;  %vm1297_vm8 = vcmp.eq.f32.partialorder %v1296_v57, 8.507059e+37 }
 0x1a3   :  { %v1275_v32 = vmul.f32 %v2246_v16, %v1274_v46  ;;  %v809_v34 = vsub.f32 0.0, %v654_v28  ;;  %700 = vmatmul.f32.gmra.mxu2 %v532_v30  ;;  %v81_v28 = vld [vmem:[%s3416_s0 + $0x1e8] sm:$0xff] }
 0x1a5   :  { %v2248_v36 = vpop.eup %2247  ;;  %v1276_v37 = vadd.f32 %v2246_v16, %v1275_v32  ;;  %v891_v38 = vmul.f32 1.442695, %v809_v34  ;;  %v535_v32 = vmax.f32 %v418_v20, 0.0 }
 0x1a6   :  { %v2250_v39 = vpop.eup %2249  ;;  %v1000_v49 = vadd.f32 1.0, %v2248_v36 }
 0x1a7   :  { %v1280_v43 = vsel %vm1279_vm3, %v2246_v16, %v1276_v37  ;;  %v1288_v44 = vmul.f32 %v2250_v39, %v999_v19  ;;  %2251 = vpow2.f32 %v891_v38  ;;  %vm1293_vm5 = vweird.f32 %v2250_v39  ;;  %v3023_v14 = vpop.f32.mrf.mxu3 }
 0x1a8   :  { %v1285_v45 = vsel %vm1282_vm4, %v1284_v41, %v1280_v43  ;;  %2253 = vrcp.f32 %v1000_v49  ;;  %v656_v47 = vpop.f32.mrf.mxu1  ;;  %vm1294_vm7 = vmor %vm1292_vm6, %vm1293_vm5  ;;  %v1313_v26 = vand.u32 2147483648, %v1000_v49  ;;  %v1311_v12 = vand.u32 2147483647, %v1000_v49  ;;  %2136 = vmatmul.msk.f32.gmra.mxu3 %vm96_vm0, %v81_v28 }
 0x1a9   :  { %2022 = vst.msk [vmem:[%s3419_s5 + $0x78] sm:$0xff] %vm96_vm0, %v1285_v45  ;;  %v1289_v51 = vsub.f32 1.0, %v1288_v44  ;;  %v657_v52 = vadd.f32 %v3006_v4, %v656_v47  ;;  %vm1307_vm10 = vweird.f32 %v1000_v49 }
 0x1aa   :  { %v1314_v19 = vor.u32 1.1754944e-38, %v1313_v26  ;;  %vm1312_vm12 = vcmp.eq.f32.partialorder %v1311_v12, 8.507059e+37  ;;  %v83_v26 = vld [vmem:[%s3416_s0 + $0x1f8] sm:$0xff] }
 0x1ab   :  { %v1290_v55 = vmul.f32 %v2250_v39, %v1289_v51  ;;  %v810_v58 = vsub.f32 0.0, %v657_v52  ;;  %703 = vmatmul.f32.gmra.mxu2 %v533_v54  ;;  %v82_v52 = vld [vmem:[%s3416_s0 + $0x1f0] sm:$0xff] }
 0x1ad   :  { %v2252_v60 = vpop.eup %2251  ;;  %v1291_v61 = vadd.f32 %v2250_v39, %v1290_v55  ;;  %v893_v62 = vmul.f32 1.442695, %v810_v58 }
 0x1ae   :  { %v2254_v63 = vpop.eup %2253  ;;  %v1001_v2 = vadd.f32 1.0, %v2252_v60 }
 0x1af   :  { %v1295_v3 = vsel %vm1294_vm7, %v2250_v39, %v1291_v61  ;;  %v1303_v5 = vmul.f32 %v2254_v63, %v1000_v49  ;;  %2255 = vpow2.f32 %v893_v62  ;;  %vm1308_vm9 = vweird.f32 %v2254_v63  ;;  %v3036_v37 = vpop.f32.mrf.mxu3 }
 0x1b0   :  { %v1300_v24 = vsel %vm1297_vm8, %v1299_v0, %v1295_v3  ;;  %2257 = vrcp.f32 %v1001_v2  ;;  %v659_v9 = vpop.f32.mrf.mxu1  ;;  %vm1309_vm11 = vmor %vm1307_vm10, %vm1308_vm9  ;;  %v1328_v50 = vand.u32 2147483648, %v1001_v2  ;;  %v1326_v34 = vand.u32 2147483647, %v1001_v2  ;;  %2137 = vmatmul.msk.f32.gmra.mxu3 %vm96_vm0, %v82_v52 }
 0x1b1   :  { %2023 = vst.msk [vmem:[%s3419_s5 + $0x80] sm:$0xff] %vm96_vm0, %v1300_v24  ;;  %v1304_v7 = vsub.f32 1.0, %v1303_v5  ;;  %v660_v13 = vadd.f32 %v3006_v4, %v659_v9  ;;  %vm1322_vm14 = vweird.f32 %v1001_v2  ;;  %v421_v49 = vadd.f32 %v2936_v21, %v2918_v8 }
 0x1b2   :  { %v1329_v42 = vor.u32 1.1754944e-38, %v1328_v50  ;;  %vm1327_vm1 = vcmp.eq.f32.partialorder %v1326_v34, 8.507059e+37  ;;  %v424_v3 = vadd.f32 %v2936_v21, %v2942_v31 }
 0x1b3   :  { %v1305_v11 = vmul.f32 %v2254_v63, %v1304_v7  ;;  %v811_v17 = vsub.f32 0.0, %v660_v13  ;;  %706 = vmatmul.f32.gmra.mxu2 %v534_v10  ;;  %v536_v55 = vmax.f32 %v421_v49, 0.0 }
 0x1b4   :  { %v537_v12 = vmax.f32 %v424_v3, 0.0 }
 0x1b5   :  { %v2256_v15 = vpop.eup %2255  ;;  %v1306_v16 = vadd.f32 %v2254_v63, %v1305_v11  ;;  %v895_v27 = vmul.f32 1.442695, %v811_v17 }
 0x1b6   :  { %v2258_v18 = vpop.eup %2257  ;;  %v1002_v22 = vadd.f32 1.0, %v2256_v15 }
 0x1b7   :  { %v1310_v23 = vsel %vm1309_vm11, %v2254_v63, %v1306_v16  ;;  %v1318_v25 = vmul.f32 %v2258_v18, %v1001_v2  ;;  %vm1323_vm13 = vweird.f32 %v2258_v18  ;;  %v3049_v61 = vpop.f32.mrf.mxu3 }
 0x1b8   :  { %v1315_v46 = vsel %vm1312_vm12, %v1314_v19, %v1310_v23  ;;  %2259 = vrcp.f32 %v1002_v22  ;;  %v662_v30 = vpop.f32.mrf.mxu1  ;;  %vm1324_vm15 = vmor %vm1322_vm14, %vm1323_vm13  ;;  %v1343_v8 = vand.u32 2147483648, %v1002_v22  ;;  %v1341_v58 = vand.u32 2147483647, %v1002_v22  ;;  %2138 = vmatmul.msk.f32.gmra.mxu3 %vm96_vm0, %v83_v26 }
 0x1b9   :  { %2024 = vst.msk [vmem:[%s3419_s5 + $0x88] sm:$0xff] %vm96_vm0, %v1315_v46  ;;  %v1319_v29 = vsub.f32 1.0, %v1318_v25  ;;  %2261 = vpow2.f32 %v895_v27  ;;  %v663_v36 = vadd.f32 %v3006_v4, %v662_v30  ;;  %vm1337_vm3 = vweird.f32 %v1002_v22 }
 0x1ba   :  { %v1344_v0 = vor.u32 1.1754944e-38, %v1343_v8  ;;  %vm1342_vm5 = vcmp.eq.f32.partialorder %v1341_v58, 8.507059e+37 }
 0x1bb   :  { %v1320_v33 = vmul.f32 %v2258_v18, %v1319_v29  ;;  %v812_v39 = vsub.f32 0.0, %v663_v36  ;;  %709 = vmatmul.f32.gmra.mxu2 %v535_v32 }
 0x1bd   :  { %v1321_v38 = vadd.f32 %v2258_v18, %v1320_v33  ;;  %v897_v47 = vmul.f32 1.442695, %v812_v39 }
 0x1be   :  { %v2260_v41 = vpop.eup %2259 }
 0x1bf   :  { %v2262_v43 = vpop.eup %2261  ;;  %v1325_v44 = vsel %vm1324_vm15, %v2258_v18, %v1321_v38  ;;  %v1333_v45 = vmul.f32 %v2260_v41, %v1002_v22  ;;  %2263 = vpow2.f32 %v897_v47  ;;  %vm1338_vm2 = vweird.f32 %v2260_v41  ;;  %v3062_v15 = vpop.f32.mrf.mxu3 }
 0x1c0   :  { %v1330_v48 = vsel %vm1327_vm1, %v1329_v42, %v1325_v44  ;;  %v1003_v51 = vadd.f32 1.0, %v2262_v43  ;;  %v665_v54 = vpop.f32.mrf.mxu1  ;;  %vm1339_vm4 = vmor %vm1337_vm3, %vm1338_vm2  ;;  %v427_v22 = vadd.f32 %v2936_v21, %v2961_v56  ;;  %v430_v43 = vadd.f32 %v2936_v21, %v2978_v40 }
 0x1c1   :  { %2025 = vst.msk [vmem:[%s3419_s5 + $0x90] sm:$0xff] %vm96_vm0, %v1330_v48  ;;  %v1334_v53 = vsub.f32 1.0, %v1333_v45  ;;  %v666_v60 = vadd.f32 %v3006_v4, %v665_v54 }
 0x1c2   :  { %2265 = vrcp.f32 %v1003_v51  ;;  %v1358_v13 = vand.u32 2147483648, %v1003_v51  ;;  %v1356_v17 = vand.u32 2147483647, %v1003_v51  ;;  %vm1352_vm7 = vweird.f32 %v1003_v51 }
 0x1c3   :  { %v1335_v57 = vmul.f32 %v2260_v41, %v1334_v53  ;;  %v813_v63 = vsub.f32 0.0, %v666_v60  ;;  %712 = vmatmul.f32.gmra.mxu2 %v536_v55  ;;  %v538_v33 = vmax.f32 %v427_v22, 0.0  ;;  %v539_v55 = vmax.f32 %v430_v43, 0.0 }
 0x1c4   :  { %v1359_v27 = vor.u32 1.1754944e-38, %v1358_v13  ;;  %vm1357_vm9 = vcmp.eq.f32.partialorder %v1356_v17, 8.507059e+37  ;;  %v436_v22 = vadd.f32 %v2936_v21, %v3010_v59  ;;  %v439_v43 = vadd.f32 %v2936_v21, %v3023_v14 }
 0x1c5   :  { %v1336_v62 = vadd.f32 %v2260_v41, %v1335_v57  ;;  %v2264_v1 = vpop.eup %2263  ;;  %v899_v5 = vmul.f32 1.442695, %v813_v63 }
 0x1c6   :  { %v1004_v7 = vadd.f32 1.0, %v2264_v1 }
 0x1c7   :  { %v1340_v2 = vsel %vm1339_vm4, %v2260_v41, %v1336_v62  ;;  %2267 = vpow2.f32 %v899_v5  ;;  %v3071_v36 = vpop.f32.mrf.mxu3 }
 0x1c8   :  { %v2266_v24 = vpop.eup %2265  ;;  %v1345_v6 = vsel %vm1342_vm5, %v1344_v0, %v1340_v2  ;;  %2269 = vrcp.f32 %v1004_v7  ;;  %v668_v10 = vpop.f32.mrf.mxu1  ;;  %v1373_v34 = vand.u32 2147483648, %v1004_v7  ;;  %v1371_v39 = vand.u32 2147483647, %v1004_v7 }
 0x1c9   :  { %2026 = vst.msk [vmem:[%s3419_s5 + $0x98] sm:$0xff] %vm96_vm0, %v1345_v6  ;;  %v1348_v9 = vmul.f32 %v2266_v24, %v1003_v51  ;;  %v669_v11 = vadd.f32 %v3006_v4, %v668_v10  ;;  %vm1353_vm6 = vweird.f32 %v2266_v24  ;;  %vm1367_vm11 = vweird.f32 %v1004_v7 }
 0x1ca   :  { %vm1354_vm8 = vmor %vm1352_vm7, %vm1353_vm6  ;;  %v1374_v47 = vor.u32 1.1754944e-38, %v1373_v34  ;;  %vm1372_vm13 = vcmp.eq.f32.partialorder %v1371_v39, 8.507059e+37  ;;  %v433_v2 = vadd.f32 %v2936_v21, %v2992_v35 }
 0x1cb   :  { %v1349_v31 = vsub.f32 1.0, %v1348_v9  ;;  %v814_v18 = vsub.f32 0.0, %v669_v11  ;;  %715 = vmatmul.f32.gmra.mxu2 %v537_v12 }
 0x1cd   :  { %v1350_v16 = vmul.f32 %v2266_v24, %v1349_v31  ;;  %v2268_v19 = vpop.eup %2267  ;;  %v901_v23 = vmul.f32 1.442695, %v814_v18  ;;  %v540_v31 = vmax.f32 %v433_v2, 0.0  ;;  %v442_v2 = vadd.f32 %v2936_v21, %v3036_v37 }
 0x1ce   :  { %v2270_v25 = vpop.eup %2269  ;;  %v1005_v46 = vadd.f32 1.0, %v2268_v19 }
 0x1cf   :  { %v1351_v20 = vadd.f32 %v2266_v24, %v1350_v16  ;;  %v1363_v29 = vmul.f32 %v2270_v25, %v1004_v7  ;;  %2271 = vpow2.f32 %v901_v23  ;;  %vm1368_vm10 = vweird.f32 %v2270_v25  ;;  %v3080_v58 = vpop.f32.mrf.mxu3 }
 0x1d0   :  { %2273 = vrcp.f32 %v1005_v46  ;;  %v671_v30 = vpop.f32.mrf.mxu1  ;;  %vm1369_vm12 = vmor %vm1367_vm11, %vm1368_vm10  ;;  %v1388_v57 = vand.u32 2147483648, %v1005_v46  ;;  %v1386_v62 = vand.u32 2147483647, %v1005_v46  ;;  %vm1382_vm15 = vweird.f32 %v1005_v46 }
 0x1d1   :  { %v1355_v28 = vsel %vm1354_vm8, %v2266_v24, %v1351_v20  ;;  %v1364_v32 = vsub.f32 1.0, %v1363_v29  ;;  %v672_v56 = vadd.f32 %v3006_v4, %v671_v30 }
 0x1d2   :  { %v1360_v50 = vsel %vm1357_vm9, %v1359_v27, %v1355_v28  ;;  %v1389_v24 = vor.u32 1.1754944e-38, %v1388_v57  ;;  %vm1387_vm2 = vcmp.eq.f32.partialorder %v1386_v62, 8.507059e+37 }
 0x1d3   :  { %2027 = vst.msk [vmem:[%s3419_s5 + $0xa0] sm:$0xff] %vm96_vm0, %v1360_v50  ;;  %v1365_v38 = vmul.f32 %v2270_v25, %v1364_v32  ;;  %v815_v41 = vsub.f32 0.0, %v672_v56  ;;  %718 = vmatmul.f32.gmra.mxu2 %v538_v33  ;;  %v541_v32 = vmax.f32 %v436_v22, 0.0  ;;  %v445_v22 = vadd.f32 %v2936_v21, %v3049_v61 }
 0x1d5   :  { %v2272_v42 = vpop.eup %2271  ;;  %v1366_v49 = vadd.f32 %v2270_v25, %v1365_v38  ;;  %v903_v44 = vmul.f32 1.442695, %v815_v41 }
 0x1d6   :  { %v2274_v45 = vpop.eup %2273  ;;  %v1006_v48 = vadd.f32 1.0, %v2272_v42 }
 0x1d7   :  { %v1370_v51 = vsel %vm1369_vm12, %v2270_v25, %v1366_v49  ;;  %v1378_v52 = vmul.f32 %v2274_v45, %v1005_v46  ;;  %2275 = vpow2.f32 %v903_v44  ;;  %vm1383_vm14 = vweird.f32 %v2274_v45  ;;  %v3089_v13 = vpop.f32.mrf.mxu3 }
 0x1d8   :  { %v1375_v53 = vsel %vm1372_vm13, %v1374_v47, %v1370_v51  ;;  %2277 = vrcp.f32 %v1006_v48  ;;  %v674_v8 = vpop.f32.mrf.mxu1  ;;  %vm1384_vm1 = vmor %vm1382_vm15, %vm1383_vm14  ;;  %v1403_v12 = vand.u32 2147483648, %v1006_v48  ;;  %v1401_v17 = vand.u32 2147483647, %v1006_v48 }
 0x1d9   :  { %2028 = vst.msk [vmem:[%s3419_s5 + $0xa8] sm:$0xff] %vm96_vm0, %v1375_v53  ;;  %v1379_v54 = vsub.f32 1.0, %v1378_v52  ;;  %v675_v40 = vadd.f32 %v3006_v4, %v674_v8  ;;  %vm1397_vm4 = vweird.f32 %v1006_v48 }
 0x1da   :  { %v1404_v27 = vor.u32 1.1754944e-38, %v1403_v12  ;;  %vm1402_vm6 = vcmp.eq.f32.partialorder %v1401_v17, 8.507059e+37 }
 0x1db   :  { %v1380_v60 = vmul.f32 %v2274_v45, %v1379_v54  ;;  %v816_v63 = vsub.f32 0.0, %v675_v40  ;;  %721 = vmatmul.f32.gmra.mxu2 %v539_v55  ;;  %v542_v54 = vmax.f32 %v439_v43, 0.0  ;;  %v448_v43 = vadd.f32 %v2936_v21, %v3062_v15 }
 0x1dd   :  { %v2276_v0 = vpop.eup %2275  ;;  %v1381_v1 = vadd.f32 %v2274_v45, %v1380_v60  ;;  %v905_v3 = vmul.f32 1.442695, %v816_v63 }
 0x1de   :  { %v2278_v5 = vpop.eup %2277  ;;  %v1007_v6 = vadd.f32 1.0, %v2276_v0 }
 0x1df   :  { %v1385_v7 = vsel %vm1384_vm1, %v2274_v45, %v1381_v1  ;;  %v1393_v26 = vmul.f32 %v2278_v5, %v1006_v48  ;;  %2279 = vpow2.f32 %v905_v3  ;;  %vm1398_vm3 = vweird.f32 %v2278_v5  ;;  %v3098_v34 = vpop.f32.mrf.mxu3 }
 0x1e0   :  { %v1390_v9 = vsel %vm1387_vm2, %v1389_v24, %v1385_v7  ;;  %2281 = vrcp.f32 %v1007_v6  ;;  %v677_v10 = vpop.f32.mrf.mxu1  ;;  %vm1399_vm5 = vmor %vm1397_vm4, %vm1398_vm3  ;;  %v1418_v33 = vand.u32 2147483648, %v1007_v6  ;;  %v1416_v39 = vand.u32 2147483647, %v1007_v6 }
 0x1e1   :  { %2029 = vst.msk [vmem:[%s3419_s5 + $0xb0] sm:$0xff] %vm96_vm0, %v1390_v9  ;;  %v1394_v11 = vsub.f32 1.0, %v1393_v26  ;;  %v678_v35 = vadd.f32 %v3006_v4, %v677_v10  ;;  %vm1412_vm8 = vweird.f32 %v1007_v6 }
 0x1e2   :  { %v1419_v47 = vor.u32 1.1754944e-38, %v1418_v33  ;;  %vm1417_vm10 = vcmp.eq.f32.partialorder %v1416_v39, 8.507059e+37 }
 0x1e3   :  { %v1395_v16 = vmul.f32 %v2278_v5, %v1394_v11  ;;  %v817_v18 = vsub.f32 0.0, %v678_v35  ;;  %724 = vmatmul.f32.gmra.mxu2 %v540_v31  ;;  %v543_v31 = vmax.f32 %v442_v2, 0.0 }
 0x1e5   :  { %v2280_v19 = vpop.eup %2279  ;;  %v1396_v20 = vadd.f32 %v2278_v5, %v1395_v16  ;;  %v907_v23 = vmul.f32 1.442695, %v817_v18 }
 0x1e6   :  { %v2282_v25 = vpop.eup %2281  ;;  %v1008_v46 = vadd.f32 1.0, %v2280_v19 }
 0x1e7   :  { %v1400_v28 = vsel %vm1399_vm5, %v2278_v5, %v1396_v20  ;;  %v1408_v29 = vmul.f32 %v2282_v25, %v1007_v6  ;;  %2283 = vpow2.f32 %v907_v23  ;;  %vm1413_vm7 = vweird.f32 %v2282_v25  ;;  %v3107_v57 = vpop.f32.mrf.mxu3 }
 0x1e8   :  { %v1405_v50 = vsel %vm1402_vm6, %v1404_v27, %v1400_v28  ;;  %2285 = vrcp.f32 %v1008_v46  ;;  %v680_v30 = vpop.f32.mrf.mxu1  ;;  %vm1414_vm9 = vmor %vm1412_vm8, %vm1413_vm7  ;;  %v1433_v55 = vand.u32 2147483648, %v1008_v46  ;;  %v1431_v62 = vand.u32 2147483647, %v1008_v46 }
 0x1e9   :  { %2030 = vst.msk [vmem:[%s3419_s5 + $0xb8] sm:$0xff] %vm96_vm0, %v1405_v50  ;;  %v1409_v56 = vsub.f32 1.0, %v1408_v29  ;;  %v681_v59 = vadd.f32 %v3006_v4, %v680_v30  ;;  %vm1427_vm12 = vweird.f32 %v1008_v46 }
 0x1ea   :  { %v1434_v24 = vor.u32 1.1754944e-38, %v1433_v55  ;;  %vm1432_vm14 = vcmp.eq.f32.partialorder %v1431_v62, 8.507059e+37 }
 0x1eb   :  { %v1410_v38 = vmul.f32 %v2282_v25, %v1409_v56  ;;  %v818_v41 = vsub.f32 0.0, %v681_v59  ;;  %727 = vmatmul.f32.gmra.mxu2 %v541_v32  ;;  %v544_v32 = vmax.f32 %v445_v22, 0.0 }
 0x1ed   :  { %v2284_v42 = vpop.eup %2283  ;;  %v1411_v49 = vadd.f32 %v2282_v25, %v1410_v38  ;;  %v909_v44 = vmul.f32 1.442695, %v818_v41 }
 0x1ee   :  { %v2286_v45 = vpop.eup %2285  ;;  %v1009_v48 = vadd.f32 1.0, %v2284_v42 }
 0x1ef   :  { %v1415_v51 = vsel %vm1414_vm9, %v2282_v25, %v1411_v49  ;;  %v1423_v52 = vmul.f32 %v2286_v45, %v1008_v46  ;;  %2287 = vpow2.f32 %v909_v44  ;;  %vm1428_vm11 = vweird.f32 %v2286_v45  ;;  %v3116_v12 = vpop.f32.mrf.mxu3 }
 0x1f0   :  { %v1420_v53 = vsel %vm1417_vm10, %v1419_v47, %v1415_v51  ;;  %2289 = vrcp.f32 %v1009_v48  ;;  %v683_v8 = vpop.f32.mrf.mxu1  ;;  %vm1429_vm13 = vmor %vm1427_vm12, %vm1428_vm11  ;;  %v1448_v35 = vand.u32 2147483648, %v1009_v48  ;;  %v1446_v17 = vand.u32 2147483647, %v1009_v48 }
 0x1f1   :  { %2031 = vst.msk [vmem:[%s3419_s5 + $0xc0] sm:$0xff] %vm96_vm0, %v1420_v53  ;;  %v1424_v40 = vsub.f32 1.0, %v1423_v52  ;;  %v684_v14 = vadd.f32 %v3006_v4, %v683_v8  ;;  %vm1442_vm1 = vweird.f32 %v1009_v48  ;;  %v545_v8 = vmax.f32 %v448_v43, 0.0 }
 0x1f2   :  { %v1449_v27 = vor.u32 1.1754944e-38, %v1448_v35  ;;  %vm1447_vm3 = vcmp.eq.f32.partialorder %v1446_v17, 8.507059e+37  ;;  %v454_v17 = vadd.f32 %v2936_v21, %v3080_v58 }
 0x1f3   :  { %v1425_v60 = vmul.f32 %v2286_v45, %v1424_v40  ;;  %v819_v63 = vsub.f32 0.0, %v684_v14  ;;  %730 = vmatmul.f32.gmra.mxu2 %v542_v54 }
 0x1f5   :  { %v2288_v0 = vpop.eup %2287  ;;  %v1426_v1 = vadd.f32 %v2286_v45, %v1425_v60  ;;  %v911_v3 = vmul.f32 1.442695, %v819_v63  ;;  %v451_v63 = vadd.f32 %v2936_v21, %v3071_v36 }
 0x1f6   :  { %v2290_v5 = vpop.eup %2289  ;;  %v1010_v6 = vadd.f32 1.0, %v2288_v0 }
 0x1f7   :  { %v1430_v7 = vsel %vm1429_vm13, %v2286_v45, %v1426_v1  ;;  %v1438_v26 = vmul.f32 %v2290_v5, %v1009_v48  ;;  %2291 = vpow2.f32 %v911_v3  ;;  %vm1443_vm15 = vweird.f32 %v2290_v5  ;;  %v3125_v33 = vpop.f32.mrf.mxu3 }
 0x1f8   :  { %v1435_v9 = vsel %vm1432_vm14, %v1434_v24, %v1430_v7  ;;  %2293 = vrcp.f32 %v1010_v6  ;;  %v686_v10 = vpop.f32.mrf.mxu1  ;;  %vm1444_vm2 = vmor %vm1442_vm1, %vm1443_vm15  ;;  %v1463_v59 = vand.u32 2147483648, %v1010_v6  ;;  %v1461_v39 = vand.u32 2147483647, %v1010_v6 }
 0x1f9   :  { %2032 = vst.msk [vmem:[%s3419_s5 + $0xc8] sm:$0xff] %vm96_vm0, %v1435_v9  ;;  %v1439_v11 = vsub.f32 1.0, %v1438_v26  ;;  %v687_v37 = vadd.f32 %v3006_v4, %v686_v10  ;;  %vm1457_vm5 = vweird.f32 %v1010_v6  ;;  %v546_v26 = vmax.f32 %v451_v63, 0.0 }
 0x1fa   :  { %v1464_v47 = vor.u32 1.1754944e-38, %v1463_v59  ;;  %vm1462_vm7 = vcmp.eq.f32.partialorder %v1461_v39, 8.507059e+37  ;;  %v457_v39 = vadd.f32 %v2936_v21, %v3089_v13 }
 0x1fb   :  { %v1440_v16 = vmul.f32 %v2290_v5, %v1439_v11  ;;  %v820_v18 = vsub.f32 0.0, %v687_v37  ;;  %733 = vmatmul.f32.gmra.mxu2 %v543_v31 }
 0x1fd   :  { %v2292_v19 = vpop.eup %2291  ;;  %v1441_v20 = vadd.f32 %v2290_v5, %v1440_v16  ;;  %v913_v23 = vmul.f32 1.442695, %v820_v18 }
 0x1fe   :  { %v2294_v25 = vpop.eup %2293  ;;  %v1011_v46 = vadd.f32 1.0, %v2292_v19 }
 0x1ff   :  { %v1445_v28 = vsel %vm1444_vm2, %v2290_v5, %v1441_v20  ;;  %v1453_v29 = vmul.f32 %v2294_v25, %v1010_v6  ;;  %2295 = vpow2.f32 %v913_v23  ;;  %vm1458_vm4 = vweird.f32 %v2294_v25  ;;  %v3133_v15 = vpop.f32.mrf.mxu3 }
 0x200   :  { %v1450_v50 = vsel %vm1447_vm3, %v1449_v27, %v1445_v28  ;;  %2297 = vrcp.f32 %v1011_v46  ;;  %v689_v30 = vpop.f32.mrf.mxu1  ;;  %vm1459_vm6 = vmor %vm1457_vm5, %vm1458_vm4  ;;  %v1478_v40 = vand.u32 2147483648, %v1011_v46  ;;  %v1476_v55 = vand.u32 2147483647, %v1011_v46 }
 0x201   :  { %2033 = vst.msk [vmem:[%s3419_s5 + $0xd0] sm:$0xff] %vm96_vm0, %v1450_v50  ;;  %v1454_v56 = vsub.f32 1.0, %v1453_v29  ;;  %v690_v61 = vadd.f32 %v3006_v4, %v689_v30  ;;  %vm1472_vm9 = vweird.f32 %v1011_v46 }
 0x202   :  { %v1479_v1 = vor.u32 1.1754944e-38, %v1478_v40  ;;  %vm1477_vm11 = vcmp.eq.f32.partialorder %v1476_v55, 8.507059e+37 }
 0x203   :  { %v1455_v38 = vmul.f32 %v2294_v25, %v1454_v56  ;;  %v821_v41 = vsub.f32 0.0, %v690_v61  ;;  %736 = vmatmul.f32.gmra.mxu2 %v544_v32 }
 0x205   :  { %v2296_v42 = vpop.eup %2295  ;;  %v1456_v49 = vadd.f32 %v2294_v25, %v1455_v38  ;;  %v915_v44 = vmul.f32 1.442695, %v821_v41 }
 0x206   :  { %v2298_v45 = vpop.eup %2297  ;;  %v1012_v48 = vadd.f32 1.0, %v2296_v42 }
 0x207   :  { %v1460_v51 = vsel %vm1459_vm6, %v2294_v25, %v1456_v49  ;;  %v1468_v52 = vmul.f32 %v2298_v45, %v1011_v46  ;;  %2299 = vpow2.f32 %v915_v44  ;;  %vm1473_vm8 = vweird.f32 %v2298_v45  ;;  %v3142_v31 = vpop.f32.mrf.mxu3 }
 0x208   :  { %v1465_v53 = vsel %vm1462_vm7, %v1464_v47, %v1460_v51  ;;  %2301 = vrcp.f32 %v1012_v48  ;;  %vm1474_vm10 = vmor %vm1472_vm9, %vm1473_vm8  ;;  %v1493_v10 = vand.u32 2147483648, %v1012_v48  ;;  %v1491_v37 = vand.u32 2147483647, %v1012_v48 }
 0x209   :  { %2034 = vst.msk [vmem:[%s3419_s5 + $0xd8] sm:$0xff] %vm96_vm0, %v1465_v53  ;;  %v1469_v54 = vsub.f32 1.0, %v1468_v52  ;;  %vm1487_vm13 = vweird.f32 %v1012_v48  ;;  %v547_v46 = vmax.f32 %v454_v17, 0.0  ;;  %v3165_v52 = vld [vmem:[%s3415_s2] ss:$0 sm:$0xff] }
 0x20a   :  { %v1494_v19 = vor.u32 1.1754944e-38, %v1493_v10  ;;  %vm1492_vm15 = vcmp.eq.f32.partialorder %v1491_v37, 8.507059e+37  ;;  %v460_v53 = vadd.f32 %v3165_v52, %v3098_v34 }
 0x20b   :  { %v1470_v14 = vmul.f32 %v2298_v45, %v1469_v54  ;;  %739 = vmatmul.f32.gmra.mxu2 %v545_v8 }
 0x20d   :  { %v2300_v60 = vpop.eup %2299  ;;  %v1471_v62 = vadd.f32 %v2298_v45, %v1470_v14 }
 0x20e   :  { %v2302_v0 = vpop.eup %2301  ;;  %v1013_v2 = vadd.f32 1.0, %v2300_v60  ;;  %v692_v3 = vpop.f32.mrf.mxu2  ;;  %v549_v60 = vmax.f32 %v460_v53, 0.0 }
 0x20f   :  { %v1475_v5 = vsel %vm1474_vm10, %v2298_v45, %v1471_v62  ;;  %v1483_v24 = vmul.f32 %v2302_v0, %v1012_v48  ;;  %v693_v6 = vadd.f32 %v3006_v4, %v692_v3  ;;  %vm1488_vm12 = vweird.f32 %v2302_v0  ;;  %v3151_v50 = vpop.f32.mrf.mxu3 }
 0x210   :  { %v1480_v7 = vsel %vm1477_vm11, %v1479_v1, %v1475_v5  ;;  %2303 = vrcp.f32 %v1013_v2  ;;  %vm1489_vm14 = vmor %vm1487_vm13, %vm1488_vm12  ;;  %v1508_v58 = vand.u32 2147483648, %v1013_v2  ;;  %v1506_v56 = vand.u32 2147483647, %v1013_v2 }
 0x211   :  { %2035 = vst.msk [vmem:[%s3419_s5 + $0xe0] sm:$0xff] %vm96_vm0, %v1480_v7  ;;  %v1484_v9 = vsub.f32 1.0, %v1483_v24  ;;  %v822_v36 = vsub.f32 0.0, %v693_v6  ;;  %vm1502_vm2 = vweird.f32 %v1013_v2  ;;  %v548_v45 = vmax.f32 %v457_v39, 0.0 }
 0x212   :  { %v1509_v41 = vor.u32 1.1754944e-38, %v1508_v58  ;;  %vm1507_vm4 = vcmp.eq.f32.partialorder %v1506_v56, 8.507059e+37  ;;  %v463_v7 = vadd.f32 %v3165_v52, %v3107_v57 }
 0x213   :  { %v1485_v11 = vmul.f32 %v2302_v0, %v1484_v9  ;;  %v917_v35 = vmul.f32 1.442695, %v822_v36  ;;  %742 = vmatmul.f32.gmra.mxu2 %v546_v26 }
 0x215   :  { %v1486_v16 = vadd.f32 %v2302_v0, %v1485_v11  ;;  %2305 = vpow2.f32 %v917_v35 }
 0x216   :  { %v2304_v18 = vpop.eup %2303  ;;  %v695_v20 = vpop.f32.mrf.mxu2 }
 0x217   :  { %v1490_v22 = vsel %vm1489_vm14, %v2302_v0, %v1486_v16  ;;  %v1498_v23 = vmul.f32 %v2304_v18, %v1013_v2  ;;  %v696_v25 = vadd.f32 %v3006_v4, %v695_v20  ;;  %vm1503_vm1 = vweird.f32 %v2304_v18  ;;  %v3160_v48 = vpop.f32.mrf.mxu3 }
 0x218   :  { %v1495_v27 = vsel %vm1492_vm15, %v1494_v19, %v1490_v22  ;;  %vm1504_vm3 = vmor %vm1502_vm2, %vm1503_vm1  ;;  %v550_v16 = vmax.f32 %v463_v7, 0.0 }
 0x219   :  { %2036 = vst.msk [vmem:[%s3419_s5 + $0xe8] sm:$0xff] %vm96_vm0, %v1495_v27  ;;  %v1499_v28 = vsub.f32 1.0, %v1498_v23  ;;  %v823_v29 = vsub.f32 0.0, %v696_v25 }
 0x21b   :  { %v2306_v30 = vpop.eup %2305  ;;  %v1500_v32 = vmul.f32 %v2304_v18, %v1499_v28  ;;  %v919_v61 = vmul.f32 1.442695, %v823_v29  ;;  %745 = vmatmul.f32.gmra.mxu2 %v547_v46  ;;  %v466_v28 = vadd.f32 %v3165_v52, %v3116_v12 }
 0x21c   :  { %v1014_v59 = vadd.f32 1.0, %v2306_v30 }
 0x21d   :  { %v1501_v38 = vadd.f32 %v2304_v18, %v1500_v32  ;;  %2307 = vpow2.f32 %v919_v61 }
 0x21e   :  { %2309 = vrcp.f32 %v1014_v59  ;;  %v698_v42 = vpop.f32.mrf.mxu2  ;;  %v1523_v62 = vand.u32 2147483648, %v1014_v59  ;;  %v1521_v0 = vand.u32 2147483647, %v1014_v59  ;;  %vm1517_vm6 = vweird.f32 %v1014_v59 }
 0x21f   :  { %v1505_v49 = vsel %vm1504_vm3, %v2304_v18, %v1501_v38  ;;  %v699_v43 = vadd.f32 %v3006_v4, %v698_v42  ;;  %v3170_v2 = vpop.f32.mrf.mxu3  ;;  %v551_v38 = vmax.f32 %v466_v28, 0.0 }
 0x220   :  { %v1510_v44 = vsel %vm1507_vm4, %v1509_v41, %v1505_v49  ;;  %v1524_v6 = vor.u32 1.1754944e-38, %v1523_v62  ;;  %vm1522_vm8 = vcmp.eq.f32.partialorder %v1521_v0, 8.507059e+37 }
 0x221   :  { %2037 = vst.msk [vmem:[%s3419_s5 + $0xf0] sm:$0xff] %vm96_vm0, %v1510_v44  ;;  %v824_v47 = vsub.f32 0.0, %v699_v43 }
 0x223   :  { %v2308_v21 = vpop.eup %2307  ;;  %v921_v13 = vmul.f32 1.442695, %v824_v47  ;;  %748 = vmatmul.f32.gmra.mxu2 %v548_v45 }
 0x224   :  { %v2310_v51 = vpop.eup %2309  ;;  %v1015_v8 = vadd.f32 1.0, %v2308_v21 }
 0x225   :  { %v1513_v54 = vmul.f32 %v2310_v51, %v1014_v59  ;;  %2311 = vpow2.f32 %v921_v13  ;;  %vm1518_vm5 = vweird.f32 %v2310_v51  ;;  %v469_v13 = vadd.f32 %v3165_v52, %v3125_v33 }
 0x226   :  { %2313 = vrcp.f32 %v1015_v8  ;;  %v701_v40 = vpop.f32.mrf.mxu2  ;;  %vm1519_vm7 = vmor %vm1517_vm6, %vm1518_vm5  ;;  %v1538_v17 = vand.u32 2147483648, %v1015_v8  ;;  %v1536_v57 = vand.u32 2147483647, %v1015_v8  ;;  %vm1532_vm10 = vweird.f32 %v1015_v8 }
 0x227   :  { %v1514_v14 = vsub.f32 1.0, %v1513_v54  ;;  %v702_v55 = vadd.f32 %v3006_v4, %v701_v40  ;;  %v3179_v20 = vpop.f32.mrf.mxu3 }
 0x228   :  { %v1539_v46 = vor.u32 1.1754944e-38, %v1538_v17  ;;  %vm1537_vm12 = vcmp.eq.f32.partialorder %v1536_v57, 8.507059e+37 }
 0x229   :  { %v1515_v63 = vmul.f32 %v2310_v51, %v1514_v14  ;;  %v825_v1 = vsub.f32 0.0, %v702_v55 }
 0x22b   :  { %v2312_v3 = vpop.eup %2311  ;;  %v1516_v5 = vadd.f32 %v2310_v51, %v1515_v63  ;;  %v923_v34 = vmul.f32 1.442695, %v825_v1  ;;  %751 = vmatmul.f32.gmra.mxu2 %v549_v60  ;;  %v552_v60 = vmax.f32 %v469_v13, 0.0 }
 0x22c   :  { %v2314_v24 = vpop.eup %2313  ;;  %v1016_v26 = vadd.f32 1.0, %v2312_v3 }
 0x22d   :  { %v1520_v9 = vsel %vm1519_vm7, %v2310_v51, %v1516_v5  ;;  %v1528_v36 = vmul.f32 %v2314_v24, %v1015_v8  ;;  %2315 = vpow2.f32 %v923_v34  ;;  %vm1533_vm9 = vweird.f32 %v2314_v24 }
 0x22e   :  { %v1525_v10 = vsel %vm1522_vm8, %v1524_v6, %v1520_v9  ;;  %2317 = vrcp.f32 %v1016_v26  ;;  %v704_v11 = vpop.f32.mrf.mxu2  ;;  %vm1534_vm11 = vmor %vm1532_vm10, %vm1533_vm9  ;;  %v1553_v39 = vand.u32 2147483648, %v1016_v26  ;;  %v1551_v12 = vand.u32 2147483647, %v1016_v26 }
 0x22f   :  { %2038 = vst.msk [vmem:[%s3419_s5 + $0xf8] sm:$0xff] %vm96_vm0, %v1525_v10  ;;  %v1529_v37 = vsub.f32 1.0, %v1528_v36  ;;  %v705_v35 = vadd.f32 %v3006_v4, %v704_v11  ;;  %v3188_v49 = vpop.f32.mrf.mxu3  ;;  %vm1547_vm14 = vweird.f32 %v1016_v26 }
 0x230   :  { %v1554_v21 = vor.u32 1.1754944e-38, %v1553_v39  ;;  %vm1552_vm1 = vcmp.eq.f32.partialorder %v1551_v12, 8.507059e+37 }
 0x231   :  { %v1530_v18 = vmul.f32 %v2314_v24, %v1529_v37  ;;  %v826_v19 = vsub.f32 0.0, %v705_v35  ;;  %v3207_v35 = vld [vmem:[%s3418_s4] ss:$0 sm:$0xff] }
 0x233   :  { %v2316_v22 = vpop.eup %2315  ;;  %v1531_v23 = vadd.f32 %v2314_v24, %v1530_v18  ;;  %v925_v25 = vmul.f32 1.442695, %v826_v19  ;;  %754 = vmatmul.f32.gmra.mxu2 %v550_v16 }
 0x234   :  { %v2318_v27 = vpop.eup %2317  ;;  %v1017_v29 = vadd.f32 1.0, %v2316_v22 }
 0x235   :  { %v1535_v58 = vsel %vm1534_vm11, %v2314_v24, %v1531_v23  ;;  %v1543_v30 = vmul.f32 %v2318_v27, %v1016_v26  ;;  %2319 = vpow2.f32 %v925_v25  ;;  %vm1548_vm13 = vweird.f32 %v2318_v27 }
 0x236   :  { %v1540_v32 = vsel %vm1537_vm12, %v1539_v46, %v1535_v58  ;;  %2321 = vrcp.f32 %v1017_v29  ;;  %v707_v56 = vpop.f32.mrf.mxu2  ;;  %vm1549_vm15 = vmor %vm1547_vm14, %vm1548_vm13  ;;  %v1568_v62 = vand.u32 2147483648, %v1017_v29  ;;  %v1566_v33 = vand.u32 2147483647, %v1017_v29 }
 0x237   :  { %2039 = vst.msk [vmem:[%s3419_s5 + $0x100] sm:$0xff] %vm96_vm0, %v1540_v32  ;;  %v1544_v61 = vsub.f32 1.0, %v1543_v30  ;;  %v708_v59 = vadd.f32 %v3006_v4, %v707_v56  ;;  %v492_v1 = vpop.f32.mrf.mxu3  ;;  %vm1562_vm3 = vweird.f32 %v1017_v29  ;;  %v475_v30 = vadd.f32 %v3165_v52, %v3142_v31 }
 0x238   :  { %v493_v24 = vadd.f32 %v3165_v52, %v492_v1  ;;  %v1569_v7 = vor.u32 1.1754944e-38, %v1568_v62  ;;  %vm1567_vm5 = vcmp.eq.f32.partialorder %v1566_v33, 8.507059e+37 }
 0x239   :  { %v1545_v41 = vmul.f32 %v2318_v27, %v1544_v61  ;;  %v827_v42 = vsub.f32 0.0, %v708_v59 }
 0x23a   :  { %v560_v16 = vmax.f32 %v493_v24, 0.0 }
 0x23b   :  { %v2320_v43 = vpop.eup %2319  ;;  %v1546_v44 = vadd.f32 %v2318_v27, %v1545_v41  ;;  %v927_v45 = vmul.f32 1.442695, %v827_v42  ;;  %757 = vmatmul.f32.gmra.mxu2 %v551_v38  ;;  %v554_v42 = vmax.f32 %v475_v30, 0.0 }
 0x23c   :  { %v2322_v47 = vpop.eup %2321  ;;  %v1018_v51 = vadd.f32 1.0, %v2320_v43  ;;  %784 = vmatmul.f32.vlgmr.msrb.gmra.mxu3 %v560_v16 }
 0x23d   :  { %v1550_v53 = vsel %vm1549_vm15, %v2318_v27, %v1546_v44  ;;  %v1558_v8 = vmul.f32 %v2322_v47, %v1017_v29  ;;  %2323 = vpow2.f32 %v927_v45  ;;  %vm1563_vm2 = vweird.f32 %v2322_v47 }
 0x23e   :  { %v1555_v54 = vsel %vm1552_vm1, %v1554_v21, %v1550_v53  ;;  %2325 = vrcp.f32 %v1018_v51  ;;  %v710_v40 = vpop.f32.mrf.mxu2  ;;  %vm1564_vm4 = vmor %vm1562_vm3, %vm1563_vm2  ;;  %v1583_v18 = vand.u32 2147483648, %v1018_v51  ;;  %v1581_v19 = vand.u32 2147483647, %v1018_v51 }
 0x23f   :  { %2040 = vst.msk [vmem:[%s3419_s5 + $0x108] sm:$0xff] %vm96_vm0, %v1555_v54  ;;  %v1559_v14 = vsub.f32 1.0, %v1558_v8  ;;  %v711_v55 = vadd.f32 %v3006_v4, %v710_v40  ;;  %v472_v4 = vadd.f32 %v3165_v52, %v3133_v15  ;;  %v495_v23 = vpop.f32.mrf.mxu3  ;;  %vm1577_vm7 = vweird.f32 %v1018_v51 }
 0x240   :  { %v496_v28 = vadd.f32 %v3165_v52, %v495_v23  ;;  %v1584_v58 = vor.u32 1.1754944e-38, %v1583_v18  ;;  %vm1582_vm9 = vcmp.eq.f32.partialorder %v1581_v19, 8.507059e+37  ;;  %v478_v8 = vadd.f32 %v3165_v52, %v3151_v50 }
 0x241   :  { %v1560_v63 = vmul.f32 %v2322_v47, %v1559_v14  ;;  %v828_v0 = vsub.f32 0.0, %v711_v55  ;;  %v553_v17 = vmax.f32 %v472_v4, 0.0  ;;  %v481_v4 = vadd.f32 %v3165_v52, %v3160_v48 }
 0x242   :  { %v561_v12 = vmax.f32 %v496_v28, 0.0  ;;  %v555_v33 = vmax.f32 %v478_v8, 0.0 }
 0x243   :  { %v2324_v3 = vpop.eup %2323  ;;  %v1561_v5 = vadd.f32 %v2322_v47, %v1560_v63  ;;  %v929_v34 = vmul.f32 1.442695, %v828_v0  ;;  %760 = vmatmul.f32.gmra.mxu2 %v552_v60  ;;  %v556_v16 = vmax.f32 %v481_v4, 0.0 }
 0x244   :  { %v2326_v6 = vpop.eup %2325  ;;  %v1019_v26 = vadd.f32 1.0, %v2324_v3  ;;  %787 = vmatmul.f32.gmra.mxu3 %v561_v12 }
 0x245   :  { %v1565_v9 = vsel %vm1564_vm4, %v2322_v47, %v1561_v5  ;;  %v1573_v36 = vmul.f32 %v2326_v6, %v1018_v51  ;;  %2327 = vpow2.f32 %v929_v34  ;;  %vm1578_vm6 = vweird.f32 %v2326_v6 }
 0x246   :  { %v1570_v10 = vsel %vm1567_vm5, %v1569_v7, %v1565_v9  ;;  %2329 = vrcp.f32 %v1019_v26  ;;  %v713_v11 = vpop.f32.mrf.mxu2  ;;  %vm1579_vm8 = vmor %vm1577_vm7, %vm1578_vm6  ;;  %v1598_v43 = vand.u32 2147483648, %v1019_v26  ;;  %v1596_v44 = vand.u32 2147483647, %v1019_v26 }
 0x247   :  { %2041 = vst.msk [vmem:[%s3419_s5 + $0x110] sm:$0xff] %vm96_vm0, %v1570_v10  ;;  %v1574_v37 = vsub.f32 1.0, %v1573_v36  ;;  %v714_v15 = vadd.f32 %v3207_v35, %v713_v11  ;;  %vm1592_vm11 = vweird.f32 %v1019_v26 }
 0x248   :  { %v1599_v53 = vor.u32 1.1754944e-38, %v1598_v43  ;;  %vm1597_vm13 = vcmp.eq.f32.partialorder %v1596_v44, 8.507059e+37 }
 0x249   :  { %v1575_v57 = vmul.f32 %v2326_v6, %v1574_v37  ;;  %v829_v22 = vsub.f32 0.0, %v714_v15 }
 0x24b   :  { %v2328_v25 = vpop.eup %2327  ;;  %v1576_v27 = vadd.f32 %v2326_v6, %v1575_v57  ;;  %v931_v46 = vmul.f32 1.442695, %v829_v22  ;;  %763 = vmatmul.f32.gmra.mxu2 %v553_v17 }
 0x24c   :  { %v2330_v29 = vpop.eup %2329  ;;  %v1020_v32 = vadd.f32 1.0, %v2328_v25 }
 0x24d   :  { %v1580_v56 = vsel %vm1579_vm8, %v2326_v6, %v1576_v27  ;;  %v1588_v61 = vmul.f32 %v2330_v29, %v1019_v26  ;;  %2331 = vpow2.f32 %v931_v46  ;;  %vm1593_vm10 = vweird.f32 %v2330_v29 }
 0x24e   :  { %v1585_v59 = vsel %vm1582_vm9, %v1584_v58, %v1580_v56  ;;  %2333 = vrcp.f32 %v1020_v32  ;;  %v716_v38 = vpop.f32.mrf.mxu2  ;;  %vm1594_vm12 = vmor %vm1592_vm11, %vm1593_vm10  ;;  %v1613_v0 = vand.u32 2147483648, %v1020_v32  ;;  %v1611_v50 = vand.u32 2147483647, %v1020_v32 }
 0x24f   :  { %2042 = vst.msk [vmem:[%s3419_s5 + $0x118] sm:$0xff] %vm96_vm0, %v1585_v59  ;;  %v1589_v39 = vsub.f32 1.0, %v1588_v61  ;;  %v717_v41 = vadd.f32 %v3207_v35, %v716_v38  ;;  %vm1607_vm15 = vweird.f32 %v1020_v32  ;;  %v484_v46 = vadd.f32 %v3165_v52, %v3170_v2 }
 0x250   :  { %v1614_v7 = vor.u32 1.1754944e-38, %v1613_v0  ;;  %vm1612_vm2 = vcmp.eq.f32.partialorder %v1611_v50, 8.507059e+37  ;;  %v490_v50 = vadd.f32 %v3165_v52, %v3188_v49 }
 0x251   :  { %v1590_v31 = vmul.f32 %v2330_v29, %v1589_v39  ;;  %v830_v45 = vsub.f32 0.0, %v717_v41  ;;  %v557_v59 = vmax.f32 %v484_v46, 0.0 }
 0x253   :  { %v2332_v47 = vpop.eup %2331  ;;  %v1591_v21 = vadd.f32 %v2330_v29, %v1590_v31  ;;  %v933_v13 = vmul.f32 1.442695, %v830_v45  ;;  %766 = vmatmul.f32.gmra.mxu2 %v554_v42  ;;  %v487_v45 = vadd.f32 %v3165_v52, %v3179_v20 }
 0x254   :  { %v2334_v51 = vpop.eup %2333  ;;  %v1021_v54 = vadd.f32 1.0, %v2332_v47 }
 0x255   :  { %v1595_v40 = vsel %vm1594_vm12, %v2330_v29, %v1591_v21  ;;  %v1603_v14 = vmul.f32 %v2334_v51, %v1020_v32  ;;  %2335 = vpow2.f32 %v933_v13  ;;  %vm1608_vm14 = vweird.f32 %v2334_v51 }
 0x256   :  { %v1600_v55 = vsel %vm1597_vm13, %v1599_v53, %v1595_v40  ;;  %2337 = vrcp.f32 %v1021_v54  ;;  %v719_v60 = vpop.f32.mrf.mxu2  ;;  %vm1609_vm1 = vmor %vm1607_vm15, %vm1608_vm14  ;;  %v1628_v17 = vand.u32 2147483648, %v1021_v54  ;;  %v1626_v48 = vand.u32 2147483647, %v1021_v54 }
 0x257   :  { %2043 = vst.msk [vmem:[%s3419_s5 + $0x120] sm:$0xff] %vm96_vm0, %v1600_v55  ;;  %v1604_v62 = vsub.f32 1.0, %v1603_v14  ;;  %v720_v63 = vadd.f32 %v3207_v35, %v719_v60  ;;  %vm1622_vm4 = vweird.f32 %v1021_v54  ;;  %v558_v40 = vmax.f32 %v487_v45, 0.0 }
 0x258   :  { %v1629_v27 = vor.u32 1.1754944e-38, %v1628_v17  ;;  %vm1627_vm6 = vcmp.eq.f32.partialorder %v1626_v48, 8.507059e+37 }
 0x259   :  { %v1605_v1 = vmul.f32 %v2334_v51, %v1604_v62  ;;  %v831_v3 = vsub.f32 0.0, %v720_v63 }
 0x25b   :  { %v2336_v5 = vpop.eup %2335  ;;  %v1606_v34 = vadd.f32 %v2334_v51, %v1605_v1  ;;  %v935_v24 = vmul.f32 1.442695, %v831_v3  ;;  %769 = vmatmul.f32.gmra.mxu2 %v555_v33 }
 0x25c   :  { %v2338_v6 = vpop.eup %2337  ;;  %v1022_v26 = vadd.f32 1.0, %v2336_v5 }
 0x25d   :  { %v1610_v9 = vsel %vm1609_vm1, %v2334_v51, %v1606_v34  ;;  %v1618_v36 = vmul.f32 %v2338_v6, %v1021_v54  ;;  %2339 = vpow2.f32 %v935_v24  ;;  %vm1623_vm3 = vweird.f32 %v2338_v6 }
 0x25e   :  { %v1615_v10 = vsel %vm1612_vm2, %v1614_v7, %v1610_v9  ;;  %2341 = vrcp.f32 %v1022_v26  ;;  %v722_v11 = vpop.f32.mrf.mxu2  ;;  %vm1624_vm5 = vmor %vm1622_vm4, %vm1623_vm3  ;;  %v1643_v38 = vand.u32 2147483648, %v1022_v26  ;;  %v1641_v2 = vand.u32 2147483647, %v1022_v26 }
 0x25f   :  { %2044 = vst.msk [vmem:[%s3419_s5 + $0x128] sm:$0xff] %vm96_vm0, %v1615_v10  ;;  %v1619_v37 = vsub.f32 1.0, %v1618_v36  ;;  %v723_v15 = vadd.f32 %v3207_v35, %v722_v11  ;;  %vm1637_vm8 = vweird.f32 %v1022_v26 }
 0x260   :  { %v1644_v44 = vor.u32 1.1754944e-38, %v1643_v38  ;;  %vm1642_vm10 = vcmp.eq.f32.partialorder %v1641_v2, 8.507059e+37 }
 0x261   :  { %v1620_v18 = vmul.f32 %v2338_v6, %v1619_v37  ;;  %v832_v57 = vsub.f32 0.0, %v723_v15 }
 0x263   :  { %v2340_v19 = vpop.eup %2339  ;;  %v1621_v22 = vadd.f32 %v2338_v6, %v1620_v18  ;;  %v937_v23 = vmul.f32 1.442695, %v832_v57  ;;  %772 = vmatmul.f32.gmra.mxu2 %v556_v16 }
 0x264   :  { %v2342_v25 = vpop.eup %2341  ;;  %v1023_v28 = vadd.f32 1.0, %v2340_v19 }
 0x265   :  { %v1625_v29 = vsel %vm1624_vm5, %v2338_v6, %v1621_v22  ;;  %v1633_v58 = vmul.f32 %v2342_v25, %v1022_v26  ;;  %2343 = vpow2.f32 %v937_v23  ;;  %vm1638_vm7 = vweird.f32 %v2342_v25 }
 0x266   :  { %v1630_v30 = vsel %vm1627_vm6, %v1629_v27, %v1625_v29  ;;  %2345 = vrcp.f32 %v1023_v28  ;;  %v725_v32 = vpop.f32.mrf.mxu2  ;;  %vm1639_vm9 = vmor %vm1637_vm8, %vm1638_vm7  ;;  %v1658_v14 = vand.u32 2147483648, %v1023_v28  ;;  %v1656_v20 = vand.u32 2147483647, %v1023_v28 }
 0x267   :  { %2045 = vst.msk [vmem:[%s3419_s5 + $0x130] sm:$0xff] %vm96_vm0, %v1630_v30  ;;  %v1634_v56 = vsub.f32 1.0, %v1633_v58  ;;  %v726_v61 = vadd.f32 %v3207_v35, %v725_v32  ;;  %vm1652_vm12 = vweird.f32 %v1023_v28  ;;  %v559_v26 = vmax.f32 %v490_v50, 0.0 }
 0x268   :  { %v1659_v1 = vor.u32 1.1754944e-38, %v1658_v14  ;;  %vm1657_vm14 = vcmp.eq.f32.partialorder %v1656_v20, 8.507059e+37 }
 0x269   :  { %v1635_v39 = vmul.f32 %v2342_v25, %v1634_v56  ;;  %v833_v41 = vsub.f32 0.0, %v726_v61 }
 0x26b   :  { %v2344_v12 = vpop.eup %2343  ;;  %v1636_v42 = vadd.f32 %v2342_v25, %v1635_v39  ;;  %v939_v43 = vmul.f32 1.442695, %v833_v41  ;;  %775 = vmatmul.f32.gmra.mxu2 %v557_v59 }
 0x26c   :  { %v2346_v31 = vpop.eup %2345  ;;  %v1024_v47 = vadd.f32 1.0, %v2344_v12 }
 0x26d   :  { %v1640_v21 = vsel %vm1639_vm9, %v2342_v25, %v1636_v42  ;;  %v1648_v13 = vmul.f32 %v2346_v31, %v1023_v28  ;;  %2347 = vpow2.f32 %v939_v43  ;;  %vm1653_vm11 = vweird.f32 %v2346_v31 }
 0x26e   :  { %v1645_v51 = vsel %vm1642_vm10, %v1644_v44, %v1640_v21  ;;  %2349 = vrcp.f32 %v1024_v47  ;;  %v728_v53 = vpop.f32.mrf.mxu2  ;;  %vm1654_vm13 = vmor %vm1652_vm12, %vm1653_vm11  ;;  %v1673_v9 = vand.u32 2147483648, %v1024_v47  ;;  %v1671_v52 = vand.u32 2147483647, %v1024_v47 }
 0x26f   :  { %2046 = vst.msk [vmem:[%s3419_s5 + $0x138] sm:$0xff] %vm96_vm0, %v1645_v51  ;;  %v1649_v8 = vsub.f32 1.0, %v1648_v13  ;;  %v729_v54 = vadd.f32 %v3207_v35, %v728_v53  ;;  %vm1667_vm1 = vweird.f32 %v1024_v47 }
 0x270   :  { %v1674_v16 = vor.u32 1.1754944e-38, %v1673_v9  ;;  %vm1672_vm3 = vcmp.eq.f32.partialorder %v1671_v52, 8.507059e+37 }
 0x271   :  { %v1650_v55 = vmul.f32 %v2346_v31, %v1649_v8  ;;  %v834_v60 = vsub.f32 0.0, %v729_v54 }
 0x273   :  { %v2348_v62 = vpop.eup %2347  ;;  %v1651_v63 = vadd.f32 %v2346_v31, %v1650_v55  ;;  %v941_v33 = vmul.f32 1.442695, %v834_v60  ;;  %778 = vmatmul.f32.gmra.mxu2 %v558_v40 }
 0x274   :  { %v2350_v0 = vpop.eup %2349  ;;  %v1025_v3 = vadd.f32 1.0, %v2348_v62 }
 0x275   :  { %v1655_v5 = vsel %vm1654_vm13, %v2346_v31, %v1651_v63  ;;  %v1663_v34 = vmul.f32 %v2350_v0, %v1024_v47  ;;  %2351 = vpow2.f32 %v941_v33  ;;  %vm1668_vm15 = vweird.f32 %v2350_v0 }
 0x276   :  { %v1660_v24 = vsel %vm1657_vm14, %v1659_v1, %v1655_v5  ;;  %2353 = vrcp.f32 %v1025_v3  ;;  %v731_v6 = vpop.f32.mrf.mxu2  ;;  %vm1669_vm2 = vmor %vm1667_vm1, %vm1668_vm15  ;;  %v1688_v25 = vand.u32 2147483648, %v1025_v3  ;;  %v1686_v46 = vand.u32 2147483647, %v1025_v3 }
 0x277   :  { %2047 = vst.msk [vmem:[%s3419_s5 + $0x140] sm:$0xff] %vm96_vm0, %v1660_v24  ;;  %v1664_v7 = vsub.f32 1.0, %v1663_v34  ;;  %v732_v4 = vadd.f32 %v3207_v35, %v731_v6  ;;  %vm1682_vm5 = vweird.f32 %v1025_v3 }
 0x278   :  { %v1689_v56 = vor.u32 1.1754944e-38, %v1688_v25  ;;  %vm1687_vm7 = vcmp.eq.f32.partialorder %v1686_v46, 8.507059e+37 }
 0x279   :  { %v1665_v36 = vmul.f32 %v2350_v0, %v1664_v7  ;;  %v835_v49 = vsub.f32 0.0, %v732_v4 }
 0x27b   :  { %v2352_v10 = vpop.eup %2351  ;;  %v1666_v11 = vadd.f32 %v2350_v0, %v1665_v36  ;;  %v943_v37 = vmul.f32 1.442695, %v835_v49  ;;  %781 = vmatmul.f32.gmra.mxu2 %v559_v26 }
 0x27c   :  { %v2354_v15 = vpop.eup %2353  ;;  %v1026_v17 = vadd.f32 1.0, %v2352_v10 }
 0x27d   :  { %v1670_v18 = vsel %vm1669_vm2, %v2350_v0, %v1666_v11  ;;  %v1678_v48 = vmul.f32 %v2354_v15, %v1025_v3  ;;  %2355 = vpow2.f32 %v943_v37  ;;  %vm1683_vm4 = vweird.f32 %v2354_v15 }
 0x27e   :  { %v1675_v57 = vsel %vm1672_vm3, %v1674_v16, %v1670_v18  ;;  %2357 = vrcp.f32 %v1026_v17  ;;  %v734_v19 = vpop.f32.mrf.mxu2  ;;  %vm1684_vm6 = vmor %vm1682_vm5, %vm1683_vm4  ;;  %v1703_v42 = vand.u32 2147483648, %v1026_v17  ;;  %v1701_v31 = vand.u32 2147483647, %v1026_v17 }
 0x27f   :  { %2048 = vst.msk [vmem:[%s3419_s5 + $0x148] sm:$0xff] %vm96_vm0, %v1675_v57  ;;  %v1679_v22 = vsub.f32 1.0, %v1678_v48  ;;  %v735_v23 = vadd.f32 %v3207_v35, %v734_v19  ;;  %vm1697_vm9 = vweird.f32 %v1026_v17 }
 0x280   :  { %v1704_v51 = vor.u32 1.1754944e-38, %v1703_v42  ;;  %vm1702_vm11 = vcmp.eq.f32.partialorder %v1701_v31, 8.507059e+37 }
 0x281   :  { %v1680_v27 = vmul.f32 %v2354_v15, %v1679_v22  ;;  %v836_v28 = vsub.f32 0.0, %v735_v23 }
 0x283   :  { %v2356_v29 = vpop.eup %2355  ;;  %v1681_v58 = vadd.f32 %v2354_v15, %v1680_v27  ;;  %v945_v30 = vmul.f32 1.442695, %v836_v28 }
 0x284   :  { %v2358_v32 = vpop.eup %2357  ;;  %v1027_v61 = vadd.f32 1.0, %v2356_v29 }
 0x285   :  { %v1685_v59 = vsel %vm1684_vm6, %v2354_v15, %v1681_v58  ;;  %v1693_v38 = vmul.f32 %v2358_v32, %v1026_v17  ;;  %2359 = vpow2.f32 %v945_v30  ;;  %vm1698_vm8 = vweird.f32 %v2358_v32 }
 0x286   :  { %v1690_v39 = vsel %vm1687_vm7, %v1689_v56, %v1685_v59  ;;  %2361 = vrcp.f32 %v1027_v61  ;;  %v737_v2 = vpop.f32.mrf.mxu2  ;;  %vm1699_vm10 = vmor %vm1697_vm9, %vm1698_vm8  ;;  %v1718_v60 = vand.u32 2147483648, %v1027_v61  ;;  %v1716_v63 = vand.u32 2147483647, %v1027_v61 }
 0x287   :  { %2049 = vst.msk [vmem:[%s3419_s5 + $0x150] sm:$0xff] %vm96_vm0, %v1690_v39  ;;  %v1694_v41 = vsub.f32 1.0, %v1693_v38  ;;  %v738_v12 = vadd.f32 %v3207_v35, %v737_v2  ;;  %vm1712_vm13 = vweird.f32 %v1027_v61 }
 0x288   :  { %v1719_v5 = vor.u32 1.1754944e-38, %v1718_v60  ;;  %vm1717_vm15 = vcmp.eq.f32.partialorder %v1716_v63, 8.507059e+37 }
 0x289   :  { %v1695_v43 = vmul.f32 %v2358_v32, %v1694_v41  ;;  %v837_v44 = vsub.f32 0.0, %v738_v12 }
 0x28b   :  { %v2360_v45 = vpop.eup %2359  ;;  %v1696_v47 = vadd.f32 %v2358_v32, %v1695_v43  ;;  %v947_v21 = vmul.f32 1.442695, %v837_v44 }
 0x28c   :  { %v2362_v13 = vpop.eup %2361  ;;  %v1028_v53 = vadd.f32 1.0, %v2360_v45 }
 0x28d   :  { %v1700_v8 = vsel %vm1699_vm10, %v2358_v32, %v1696_v47  ;;  %v1708_v54 = vmul.f32 %v2362_v13, %v1027_v61  ;;  %2363 = vpow2.f32 %v947_v21  ;;  %vm1713_vm12 = vweird.f32 %v2362_v13 }
 0x28e   :  { %v1705_v40 = vsel %vm1702_vm11, %v1704_v51, %v1700_v8  ;;  %2365 = vrcp.f32 %v1028_v53  ;;  %v740_v14 = vpop.f32.mrf.mxu2  ;;  %vm1714_vm14 = vmor %vm1712_vm13, %vm1713_vm12  ;;  %v1733_v36 = vand.u32 2147483648, %v1028_v53  ;;  %v1731_v49 = vand.u32 2147483647, %v1028_v53 }
 0x28f   :  { %2050 = vst.msk [vmem:[%s3419_s5 + $0x158] sm:$0xff] %vm96_vm0, %v1705_v40  ;;  %v1709_v55 = vsub.f32 1.0, %v1708_v54  ;;  %v741_v20 = vadd.f32 %v3207_v35, %v740_v14  ;;  %vm1727_vm2 = vweird.f32 %v1028_v53 }
 0x290   :  { %v1734_v17 = vor.u32 1.1754944e-38, %v1733_v36  ;;  %vm1732_vm4 = vcmp.eq.f32.partialorder %v1731_v49, 8.507059e+37 }
 0x291   :  { %v1710_v62 = vmul.f32 %v2362_v13, %v1709_v55  ;;  %v838_v33 = vsub.f32 0.0, %v741_v20 }
 0x293   :  { %v2364_v0 = vpop.eup %2363  ;;  %v1711_v1 = vadd.f32 %v2362_v13, %v1710_v62  ;;  %v949_v50 = vmul.f32 1.442695, %v838_v33 }
 0x294   :  { %v2366_v3 = vpop.eup %2365  ;;  %v1029_v34 = vadd.f32 1.0, %v2364_v0 }
 0x295   :  { %v1715_v24 = vsel %vm1714_vm14, %v2362_v13, %v1711_v1  ;;  %v1723_v6 = vmul.f32 %v2366_v3, %v1028_v53  ;;  %2367 = vpow2.f32 %v949_v50  ;;  %vm1728_vm1 = vweird.f32 %v2366_v3 }
 0x296   :  { %v1720_v7 = vsel %vm1717_vm15, %v1719_v5, %v1715_v24  ;;  %2369 = vrcp.f32 %v1029_v34  ;;  %v743_v4 = vpop.f32.mrf.mxu2  ;;  %vm1729_vm3 = vmor %vm1727_vm2, %vm1728_vm1  ;;  %v1748_v27 = vand.u32 2147483648, %v1029_v34  ;;  %v1746_v28 = vand.u32 2147483647, %v1029_v34 }
 0x297   :  { %2051 = vst.msk [vmem:[%s3419_s5 + $0x160] sm:$0xff] %vm96_vm0, %v1720_v7  ;;  %v1724_v26 = vsub.f32 1.0, %v1723_v6  ;;  %v744_v9 = vadd.f32 %v3207_v35, %v743_v4  ;;  %vm1742_vm6 = vweird.f32 %v1029_v34 }
 0x298   :  { %v1749_v61 = vor.u32 1.1754944e-38, %v1748_v27  ;;  %vm1747_vm8 = vcmp.eq.f32.partialorder %v1746_v28, 8.507059e+37 }
 0x299   :  { %v1725_v52 = vmul.f32 %v2366_v3, %v1724_v26  ;;  %v839_v10 = vsub.f32 0.0, %v744_v9 }
 0x29b   :  { %v2368_v11 = vpop.eup %2367  ;;  %v1726_v37 = vadd.f32 %v2366_v3, %v1725_v52  ;;  %v951_v15 = vmul.f32 1.442695, %v839_v10 }
 0x29c   :  { %v2370_v16 = vpop.eup %2369  ;;  %v1030_v18 = vadd.f32 1.0, %v2368_v11 }
 0x29d   :  { %v1730_v48 = vsel %vm1729_vm3, %v2366_v3, %v1726_v37  ;;  %v1738_v57 = vmul.f32 %v2370_v16, %v1029_v34  ;;  %2371 = vpow2.f32 %v951_v15  ;;  %vm1743_vm5 = vweird.f32 %v2370_v16 }
 0x29e   :  { %v1735_v19 = vsel %vm1732_vm4, %v1734_v17, %v1730_v48  ;;  %2373 = vrcp.f32 %v1030_v18  ;;  %v746_v22 = vpop.f32.mrf.mxu2  ;;  %vm1744_vm7 = vmor %vm1742_vm6, %vm1743_vm5  ;;  %v1763_v43 = vand.u32 2147483648, %v1030_v18  ;;  %v1761_v44 = vand.u32 2147483647, %v1030_v18 }
 0x29f   :  { %2052 = vst.msk [vmem:[%s3419_s5 + $0x168] sm:$0xff] %vm96_vm0, %v1735_v19  ;;  %v1739_v23 = vsub.f32 1.0, %v1738_v57  ;;  %v747_v25 = vadd.f32 %v3207_v35, %v746_v22  ;;  %vm1757_vm10 = vweird.f32 %v1030_v18 }
 0x2a0   :  { %v1764_v53 = vor.u32 1.1754944e-38, %v1763_v43  ;;  %vm1762_vm12 = vcmp.eq.f32.partialorder %v1761_v44, 8.507059e+37 }
 0x2a1   :  { %v1740_v46 = vmul.f32 %v2370_v16, %v1739_v23  ;;  %v840_v29 = vsub.f32 0.0, %v747_v25 }
 0x2a3   :  { %v2372_v58 = vpop.eup %2371  ;;  %v1741_v30 = vadd.f32 %v2370_v16, %v1740_v46  ;;  %v953_v32 = vmul.f32 1.442695, %v840_v29 }
 0x2a4   :  { %v2374_v56 = vpop.eup %2373  ;;  %v1031_v59 = vadd.f32 1.0, %v2372_v58 }
 0x2a5   :  { %v1745_v38 = vsel %vm1744_vm7, %v2370_v16, %v1741_v30  ;;  %v1753_v39 = vmul.f32 %v2374_v56, %v1030_v18  ;;  %2375 = vpow2.f32 %v953_v32  ;;  %vm1758_vm9 = vweird.f32 %v2374_v56 }
 0x2a6   :  { %v1750_v2 = vsel %vm1747_vm8, %v1749_v61, %v1745_v38  ;;  %2377 = vrcp.f32 %v1031_v59  ;;  %v749_v41 = vpop.f32.mrf.mxu2  ;;  %vm1759_vm11 = vmor %vm1757_vm10, %vm1758_vm9  ;;  %v1778_v62 = vand.u32 2147483648, %v1031_v59  ;;  %v1776_v33 = vand.u32 2147483647, %v1031_v59 }
 0x2a7   :  { %2053 = vst.msk [vmem:[%s3419_s5 + $0x170] sm:$0xff] %vm96_vm0, %v1750_v2  ;;  %v1754_v12 = vsub.f32 1.0, %v1753_v39  ;;  %v750_v42 = vadd.f32 %v3207_v35, %v749_v41  ;;  %vm1772_vm14 = vweird.f32 %v1031_v59 }
 0x2a8   :  { %v1779_v34 = vor.u32 1.1754944e-38, %v1778_v62  ;;  %vm1777_vm1 = vcmp.eq.f32.partialorder %v1776_v33, 8.507059e+37 }
 0x2a9   :  { %v1755_v31 = vmul.f32 %v2374_v56, %v1754_v12  ;;  %v841_v45 = vsub.f32 0.0, %v750_v42 }
 0x2ab   :  { %v2376_v47 = vpop.eup %2375  ;;  %v1756_v21 = vadd.f32 %v2374_v56, %v1755_v31  ;;  %v955_v13 = vmul.f32 1.442695, %v841_v45 }
 0x2ac   :  { %v2378_v51 = vpop.eup %2377  ;;  %v1032_v8 = vadd.f32 1.0, %v2376_v47 }
 0x2ad   :  { %v1760_v54 = vsel %vm1759_vm11, %v2374_v56, %v1756_v21  ;;  %v1768_v40 = vmul.f32 %v2378_v51, %v1031_v59  ;;  %2379 = vpow2.f32 %v955_v13  ;;  %vm1773_vm13 = vweird.f32 %v2378_v51 }
 0x2ae   :  { %v1765_v14 = vsel %vm1762_vm12, %v1764_v53, %v1760_v54  ;;  %2381 = vrcp.f32 %v1032_v8  ;;  %v752_v55 = vpop.f32.mrf.mxu2  ;;  %vm1774_vm15 = vmor %vm1772_vm14, %vm1773_vm13  ;;  %v1793_v52 = vand.u32 2147483648, %v1032_v8  ;;  %v1791_v10 = vand.u32 2147483647, %v1032_v8 }
 0x2af   :  { %2054 = vst.msk [vmem:[%s3419_s5 + $0x178] sm:$0xff] %vm96_vm0, %v1765_v14  ;;  %v1769_v20 = vsub.f32 1.0, %v1768_v40  ;;  %v753_v60 = vadd.f32 %v3207_v35, %v752_v55  ;;  %vm1787_vm3 = vweird.f32 %v1032_v8 }
 0x2b0   :  { %v1794_v18 = vor.u32 1.1754944e-38, %v1793_v52  ;;  %vm1792_vm5 = vcmp.eq.f32.partialorder %v1791_v10, 8.507059e+37 }
 0x2b1   :  { %v1770_v63 = vmul.f32 %v2378_v51, %v1769_v20  ;;  %v842_v0 = vsub.f32 0.0, %v753_v60 }
 0x2b3   :  { %v2380_v1 = vpop.eup %2379  ;;  %v1771_v50 = vadd.f32 %v2378_v51, %v1770_v63  ;;  %v957_v3 = vmul.f32 1.442695, %v842_v0 }
 0x2b4   :  { %v2382_v5 = vpop.eup %2381  ;;  %v1033_v24 = vadd.f32 1.0, %v2380_v1 }
 0x2b5   :  { %v1775_v6 = vsel %vm1774_vm15, %v2378_v51, %v1771_v50  ;;  %v1783_v7 = vmul.f32 %v2382_v5, %v1032_v8  ;;  %2383 = vpow2.f32 %v957_v3  ;;  %vm1788_vm2 = vweird.f32 %v2382_v5 }
 0x2b6   :  { %v1780_v4 = vsel %vm1777_vm1, %v1779_v34, %v1775_v6  ;;  %2385 = vrcp.f32 %v1033_v24  ;;  %v755_v26 = vpop.f32.mrf.mxu2  ;;  %vm1789_vm4 = vmor %vm1787_vm3, %vm1788_vm2  ;;  %v1808_v46 = vand.u32 2147483648, %v1033_v24  ;;  %v1806_v29 = vand.u32 2147483647, %v1033_v24 }
 0x2b7   :  { %2055 = vst.msk [vmem:[%s3419_s5 + $0x180] sm:$0xff] %vm96_vm0, %v1780_v4  ;;  %v1784_v9 = vsub.f32 1.0, %v1783_v7  ;;  %v756_v36 = vadd.f32 %v3207_v35, %v755_v26  ;;  %vm1802_vm7 = vweird.f32 %v1033_v24 }
 0x2b8   :  { %v1809_v59 = vor.u32 1.1754944e-38, %v1808_v46  ;;  %vm1807_vm9 = vcmp.eq.f32.partialorder %v1806_v29, 8.507059e+37 }
 0x2b9   :  { %v1785_v49 = vmul.f32 %v2382_v5, %v1784_v9  ;;  %v843_v11 = vsub.f32 0.0, %v756_v36 }
 0x2bb   :  { %v2384_v37 = vpop.eup %2383  ;;  %v1786_v15 = vadd.f32 %v2382_v5, %v1785_v49  ;;  %v959_v16 = vmul.f32 1.442695, %v843_v11 }
 0x2bc   :  { %v2386_v17 = vpop.eup %2385  ;;  %v1034_v48 = vadd.f32 1.0, %v2384_v37 }
 0x2bd   :  { %v1790_v57 = vsel %vm1789_vm4, %v2382_v5, %v1786_v15  ;;  %v1798_v19 = vmul.f32 %v2386_v17, %v1033_v24  ;;  %2387 = vpow2.f32 %v959_v16  ;;  %vm1803_vm6 = vweird.f32 %v2386_v17 }
 0x2be   :  { %v1795_v22 = vsel %vm1792_vm5, %v1794_v18, %v1790_v57  ;;  %2389 = vrcp.f32 %v1034_v48  ;;  %v758_v23 = vpop.f32.mrf.mxu2  ;;  %vm1804_vm8 = vmor %vm1802_vm7, %vm1803_vm6  ;;  %v1823_v31 = vand.u32 2147483648, %v1034_v48  ;;  %v1821_v45 = vand.u32 2147483647, %v1034_v48 }
 0x2bf   :  { %2056 = vst.msk [vmem:[%s3419_s5 + $0x188] sm:$0xff] %vm96_vm0, %v1795_v22  ;;  %v1799_v25 = vsub.f32 1.0, %v1798_v19  ;;  %v759_v27 = vadd.f32 %v3207_v35, %v758_v23  ;;  %vm1817_vm11 = vweird.f32 %v1034_v48  ;;  %v785_v40 = vpop.f32.mrf.mxu3 }
 0x2c0   :  { %v1824_v8 = vor.u32 1.1754944e-38, %v1823_v31  ;;  %vm1822_vm13 = vcmp.eq.f32.partialorder %v1821_v45, 8.507059e+37  ;;  %v786_v33 = vadd.f32 %v3207_v35, %v785_v40 }
 0x2c1   :  { %v1800_v28 = vmul.f32 %v2386_v17, %v1799_v25  ;;  %v844_v58 = vsub.f32 0.0, %v759_v27 }
 0x2c2   :  { %v853_v5 = vsub.f32 0.0, %v786_v33 }
 0x2c3   :  { %v2388_v30 = vpop.eup %2387  ;;  %v1801_v32 = vadd.f32 %v2386_v17, %v1800_v28  ;;  %v961_v56 = vmul.f32 1.442695, %v844_v58 }
 0x2c4   :  { %v2390_v61 = vpop.eup %2389  ;;  %v1035_v38 = vadd.f32 1.0, %v2388_v30  ;;  %v979_v7 = vmul.f32 1.442695, %v853_v5 }
 0x2c5   :  { %v1805_v39 = vsel %vm1804_vm8, %v2386_v17, %v1801_v32  ;;  %v1813_v2 = vmul.f32 %v2390_v61, %v1034_v48  ;;  %2391 = vpow2.f32 %v961_v56  ;;  %vm1818_vm10 = vweird.f32 %v2390_v61 }
 0x2c6   :  { %v1810_v41 = vsel %vm1807_vm9, %v1809_v59, %v1805_v39  ;;  %2393 = vrcp.f32 %v1035_v38  ;;  %v761_v12 = vpop.f32.mrf.mxu2  ;;  %vm1819_vm12 = vmor %vm1817_vm11, %vm1818_vm10  ;;  %v1836_v0 = vand.u32 2147483647, %v1035_v38  ;;  %v1838_v1 = vand.u32 2147483648, %v1035_v38 }
 0x2c7   :  { %2057 = vst.msk [vmem:[%s3419_s5 + $0x190] sm:$0xff] %vm96_vm0, %v1810_v41  ;;  %v1814_v42 = vsub.f32 1.0, %v1813_v2  ;;  %v762_v43 = vadd.f32 %v3207_v35, %v761_v12  ;;  %vm1832_vm15 = vweird.f32 %v1035_v38  ;;  %v788_v49 = vpop.f32.mrf.mxu3 }
 0x2c8   :  { %v1839_v26 = vor.u32 1.1754944e-38, %v1838_v1  ;;  %vm1837_vm2 = vcmp.eq.f32.partialorder %v1836_v0, 8.507059e+37  ;;  %v789_v17 = vadd.f32 %v3207_v35, %v788_v49 }
 0x2c9   :  { %v1815_v44 = vmul.f32 %v2390_v61, %v1814_v42  ;;  %v845_v47 = vsub.f32 0.0, %v762_v43 }
 0x2ca   :  { %v854_v19 = vsub.f32 0.0, %v789_v17 }
 0x2cb   :  { %v2392_v21 = vpop.eup %2391  ;;  %v1816_v13 = vadd.f32 %v2390_v61, %v1815_v44  ;;  %v963_v51 = vmul.f32 1.442695, %v845_v47 }
 0x2cc   :  { %v2394_v53 = vpop.eup %2393  ;;  %v1036_v54 = vadd.f32 1.0, %v2392_v21  ;;  %v981_v29 = vmul.f32 1.442695, %v854_v19 }
 0x2cd   :  { %v1820_v14 = vsel %vm1819_vm12, %v2390_v61, %v1816_v13  ;;  %v1828_v55 = vmul.f32 %v2394_v53, %v1035_v38  ;;  %2395 = vpow2.f32 %v963_v51  ;;  %vm1833_vm14 = vweird.f32 %v2394_v53 }
 0x2ce   :  { %v1825_v20 = vsel %vm1822_vm13, %v1824_v8, %v1820_v14  ;;  %2397 = vrcp.f32 %v1036_v54  ;;  %v764_v60 = vpop.f32.mrf.mxu2  ;;  %vm1834_vm1 = vmor %vm1832_vm15, %vm1833_vm14  ;;  %v1853_v16 = vand.u32 2147483648, %v1036_v54  ;;  %v1851_v48 = vand.u32 2147483647, %v1036_v54 }
 0x2cf   :  { %2058 = vst.msk [vmem:[%s3419_s5 + $0x198] sm:$0xff] %vm96_vm0, %v1825_v20  ;;  %v1829_v62 = vsub.f32 1.0, %v1828_v55  ;;  %v765_v63 = vadd.f32 %v3207_v35, %v764_v60  ;;  %vm1847_vm4 = vweird.f32 %v1036_v54 }
 0x2d0   :  { %v1854_v46 = vor.u32 1.1754944e-38, %v1853_v16  ;;  %vm1852_vm6 = vcmp.eq.f32.partialorder %v1851_v48, 8.507059e+37 }
 0x2d1   :  { %v1830_v50 = vmul.f32 %v2394_v53, %v1829_v62  ;;  %v846_v3 = vsub.f32 0.0, %v765_v63 }
 0x2d3   :  { %v2396_v34 = vpop.eup %2395  ;;  %v1831_v24 = vadd.f32 %v2394_v53, %v1830_v50  ;;  %v965_v6 = vmul.f32 1.442695, %v846_v3 }
 0x2d4   :  { %v2398_v4 = vpop.eup %2397  ;;  %v1037_v9 = vadd.f32 1.0, %v2396_v34 }
 0x2d5   :  { %v1835_v36 = vsel %vm1834_vm1, %v2394_v53, %v1831_v24  ;;  %v1843_v52 = vmul.f32 %v2398_v4, %v1036_v54  ;;  %2399 = vpow2.f32 %v965_v6  ;;  %vm1848_vm3 = vweird.f32 %v2398_v4 }
 0x2d6   :  { %v1840_v10 = vsel %vm1837_vm2, %v1839_v26, %v1835_v36  ;;  %2401 = vrcp.f32 %v1037_v9  ;;  %v767_v11 = vpop.f32.mrf.mxu2  ;;  %vm1849_vm5 = vmor %vm1847_vm4, %vm1848_vm3  ;;  %v1866_v2 = vand.u32 2147483647, %v1037_v9  ;;  %v1868_v41 = vand.u32 2147483648, %v1037_v9 }
 0x2d7   :  { %2059 = vst.msk [vmem:[%s3419_s5 + $0x1a0] sm:$0xff] %vm96_vm0, %v1840_v10  ;;  %v1844_v37 = vsub.f32 1.0, %v1843_v52  ;;  %v768_v15 = vadd.f32 %v3207_v35, %v767_v11  ;;  %2403 = vpow2.f32 %v979_v7  ;;  %vm1862_vm8 = vweird.f32 %v1037_v9 }
 0x2d8   :  { %v1869_v47 = vor.u32 1.1754944e-38, %v1868_v41  ;;  %vm1867_vm10 = vcmp.eq.f32.partialorder %v1866_v2, 8.507059e+37 }
 0x2d9   :  { %v1845_v18 = vmul.f32 %v2398_v4, %v1844_v37  ;;  %v847_v57 = vsub.f32 0.0, %v768_v15  ;;  %v3356_v15 = vld [vmem:[%s3418_s4] ss:$0 sm:$0xff] }
 0x2db   :  { %v2400_v22 = vpop.eup %2399  ;;  %v1846_v23 = vadd.f32 %v2398_v4, %v1845_v18  ;;  %v967_v25 = vmul.f32 1.442695, %v847_v57 }
 0x2dc   :  { %v2402_v27 = vpop.eup %2401  ;;  %v3315_v28 = vadd.f32 1.0, %v2400_v22 }
 0x2dd   :  { %v2404_v58 = vpop.eup %2403  ;;  %v1850_v30 = vsel %vm1849_vm5, %v2398_v4, %v1846_v23  ;;  %v1858_v32 = vmul.f32 %v2402_v27, %v1037_v9  ;;  %2405 = vpow2.f32 %v967_v25  ;;  %vm1863_vm7 = vweird.f32 %v2402_v27 }
 0x2de   :  { %v1855_v56 = vsel %vm1852_vm6, %v1854_v46, %v1850_v30  ;;  %2407 = vrcp.f32 %v3315_v28  ;;  %v770_v61 = vpop.f32.mrf.mxu2  ;;  %v1045_v39 = vadd.f32 1.0, %v2404_v58  ;;  %vm1864_vm9 = vmor %vm1862_vm8, %vm1863_vm7  ;;  %vm1877_vm11 = vweird.f32 %v3315_v28 }
 0x2df   :  { %2060 = vst.msk [vmem:[%s3419_s5 + $0x1a8] sm:$0xff] %vm96_vm0, %v1855_v56  ;;  %v1859_v59 = vsub.f32 1.0, %v1858_v32  ;;  %v771_v38 = vadd.f32 %v3207_v35, %v770_v61  ;;  %2409 = vpow2.f32 %v981_v29  ;;  %v1883_v20 = vand.u32 2147483648, %v3315_v28 }
 0x2e0   :  { %2411 = vrcp.f32 %v1045_v39  ;;  %v1881_v63 = vand.u32 2147483647, %v3315_v28  ;;  %vm1982_vm13 = vweird.f32 %v1045_v39  ;;  %v1988_v1 = vand.u32 2147483648, %v1045_v39 }
 0x2e1   :  { %v1860_v12 = vmul.f32 %v2402_v27, %v1859_v59  ;;  %v848_v42 = vsub.f32 0.0, %v771_v38  ;;  %v1884_v6 = vor.u32 1.1754944e-38, %v1883_v20 }
 0x2e2   :  { %vm1882_vm1 = vcmp.eq.f32.partialorder %v1881_v63, 8.507059e+37  ;;  %v1989_v49 = vor.u32 1.1754944e-38, %v1988_v1 }
 0x2e3   :  { %v2406_v43 = vpop.eup %2405  ;;  %v1861_v31 = vadd.f32 %v2402_v27, %v1860_v12  ;;  %v969_v44 = vmul.f32 1.442695, %v848_v42 }
 0x2e4   :  { %v2408_v45 = vpop.eup %2407  ;;  %v3323_v21 = vadd.f32 1.0, %v2406_v43 }
 0x2e5   :  { %v1865_v13 = vsel %vm1864_vm9, %v2402_v27, %v1861_v31  ;;  %v1873_v51 = vmul.f32 %v2408_v45, %v3315_v28  ;;  %2413 = vpow2.f32 %v969_v44  ;;  %v2410_v53 = vpop.eup %2409  ;;  %vm1878_vm12 = vweird.f32 %v2408_v45 }
 0x2e6   :  { %v1870_v8 = vsel %vm1867_vm10, %v1869_v47, %v1865_v13  ;;  %2415 = vrcp.f32 %v3323_v21  ;;  %v773_v54 = vpop.f32.mrf.mxu2  ;;  %v2412_v40 = vpop.eup %2411  ;;  %v3335_v50 = vadd.f32 1.0, %v2410_v53  ;;  %vm1879_vm15 = vmor %vm1877_vm11, %vm1878_vm12  ;;  %v1896_v17 = vand.u32 2147483647, %v3323_v21 }
 0x2e7   :  { %2061 = vst.msk [vmem:[%s3419_s5 + $0x1b0] sm:$0xff] %vm96_vm0, %v1870_v8  ;;  %v1874_v14 = vsub.f32 1.0, %v1873_v51  ;;  %v774_v55 = vadd.f32 %v3207_v35, %v773_v54  ;;  %v1978_v60 = vmul.f32 %v2412_v40, %v1045_v39  ;;  %vm1983_vm14 = vweird.f32 %v2412_v40 }
 0x2e8   :  { %v1986_v35 = vand.u32 2147483647, %v1045_v39  ;;  %2417 = vrcp.f32 %v3335_v50  ;;  %vm3345_vm2 = vmor %vm1982_vm13, %vm1983_vm14  ;;  %v1898_v18 = vand.u32 2147483648, %v3323_v21  ;;  %vm1892_vm5 = vweird.f32 %v3323_v21 }
 0x2e9   :  { %v1875_v62 = vmul.f32 %v2408_v45, %v1874_v14  ;;  %v849_v33 = vsub.f32 0.0, %v774_v55  ;;  %v1979_v0 = vsub.f32 1.0, %v1978_v60  ;;  %vm1897_vm7 = vcmp.eq.f32.partialorder %v1896_v17, 8.507059e+37 }
 0x2ea   :  { %vm1987_vm3 = vcmp.eq.f32.partialorder %v1986_v35, 8.507059e+37  ;;  %v1899_v58 = vor.u32 1.1754944e-38, %v1898_v18  ;;  %vm1997_vm8 = vweird.f32 %v3335_v50  ;;  %v2003_v59 = vand.u32 2147483648, %v3335_v50 }
 0x2eb   :  { %v2414_v3 = vpop.eup %2413  ;;  %v1876_v5 = vadd.f32 %v2408_v45, %v1875_v62  ;;  %v971_v34 = vmul.f32 1.442695, %v849_v33  ;;  %v1980_v4 = vmul.f32 %v2412_v40, %v1979_v0  ;;  %v2001_v43 = vand.u32 2147483647, %v3335_v50 }
 0x2ec   :  { %v2416_v24 = vpop.eup %2415  ;;  %v3339_v7 = vadd.f32 1.0, %v2414_v3  ;;  %v2004_v53 = vor.u32 1.1754944e-38, %v2003_v59 }
 0x2ed   :  { %v1880_v26 = vsel %vm1879_vm15, %v2408_v45, %v1876_v5  ;;  %v1888_v9 = vmul.f32 %v2416_v24, %v3323_v21  ;;  %2419 = vpow2.f32 %v971_v34  ;;  %v1981_v37 = vadd.f32 %v2412_v40, %v1980_v4 }
 0x2ee   :  { %v1885_v36 = vsel %vm1882_vm1, %v1884_v6, %v1880_v26  ;;  %2421 = vrcp.f32 %v3339_v7  ;;  %v776_v10 = vpop.f32.mrf.mxu2  ;;  %vm1893_vm4 = vweird.f32 %v2416_v24  ;;  %v2418_v22 = vpop.eup %2417  ;;  %v1911_v12 = vand.u32 2147483647, %v3339_v7 }
 0x2ef   :  { %2062 = vst.msk [vmem:[%s3419_s5 + $0x1b8] sm:$0xff] %vm96_vm0, %v1885_v36  ;;  %v1889_v11 = vsub.f32 1.0, %v1888_v9  ;;  %v777_v16 = vadd.f32 %v3356_v15, %v776_v10  ;;  %v1985_v57 = vsel %vm3345_vm2, %v2412_v40, %v1981_v37  ;;  %v1993_v28 = vmul.f32 %v2418_v22, %v3335_v50  ;;  %vm1894_vm6 = vmor %vm1892_vm5, %vm1893_vm4 }
 0x2f0   :  { %v1990_v23 = vsel %vm1987_vm3, %v1989_v49, %v1985_v57  ;;  %vm1998_vm9 = vweird.f32 %v2418_v22  ;;  %v1913_v42 = vand.u32 2147483648, %v3339_v7  ;;  %vm1907_vm11 = vweird.f32 %v3339_v7 }
 0x2f1   :  { %v1890_v48 = vmul.f32 %v2416_v24, %v1889_v11  ;;  %v850_v19 = vsub.f32 0.0, %v777_v16  ;;  %2069 = vst.msk [vmem:[%s3419_s5 + $0x1f0] sm:$0xff] %vm96_vm0, %v1990_v23  ;;  %v1994_v2 = vsub.f32 1.0, %v1993_v28  ;;  %vm3383_vm12 = vmor %vm1997_vm8, %vm1998_vm9  ;;  %vm2002_vm14 = vcmp.eq.f32.partialorder %v2001_v43, 8.507059e+37 }
 0x2f2   :  { %v1914_v40 = vor.u32 1.1754944e-38, %v1913_v42  ;;  %vm1912_vm15 = vcmp.eq.f32.partialorder %v1911_v12, 8.507059e+37 }
 0x2f3   :  { %v2420_v25 = vpop.eup %2419  ;;  %v1891_v27 = vadd.f32 %v2416_v24, %v1890_v48  ;;  %v973_v46 = vmul.f32 1.442695, %v850_v19  ;;  %v1995_v44 = vmul.f32 %v2418_v22, %v1994_v2 }
 0x2f4   :  { %v2422_v29 = vpop.eup %2421  ;;  %v1041_v30 = vadd.f32 1.0, %v2420_v25 }
 0x2f5   :  { %v1895_v32 = vsel %vm1894_vm6, %v2416_v24, %v1891_v27  ;;  %v1903_v56 = vmul.f32 %v2422_v29, %v3339_v7  ;;  %2423 = vpow2.f32 %v973_v46  ;;  %vm1908_vm10 = vweird.f32 %v2422_v29 }
 0x2f6   :  { %v1900_v61 = vsel %vm1897_vm7, %v1899_v58, %v1895_v32  ;;  %2425 = vrcp.f32 %v1041_v30  ;;  %v779_v38 = vpop.f32.mrf.mxu2  ;;  %v1996_v51 = vadd.f32 %v2418_v22, %v1995_v44  ;;  %vm1909_vm13 = vmor %vm1907_vm11, %vm1908_vm10  ;;  %v1928_v1 = vand.u32 2147483648, %v1041_v30 }
 0x2f7   :  { %2063 = vst.msk [vmem:[%s3419_s5 + $0x1c0] sm:$0xff] %vm96_vm0, %v1900_v61  ;;  %v1904_v39 = vsub.f32 1.0, %v1903_v56  ;;  %v780_v41 = vadd.f32 %v3356_v15, %v779_v38  ;;  %v1926_v5 = vand.u32 2147483647, %v1041_v30  ;;  %vm1922_vm2 = vweird.f32 %v1041_v30 }
 0x2f8   :  { %v2000_v60 = vsel %vm3383_vm12, %v2418_v22, %v1996_v51  ;;  %v1929_v6 = vor.u32 1.1754944e-38, %v1928_v1 }
 0x2f9   :  { %v1905_v31 = vmul.f32 %v2422_v29, %v1904_v39  ;;  %v851_v45 = vsub.f32 0.0, %v780_v41  ;;  %v2005_v0 = vsel %vm2002_vm14, %v2004_v53, %v2000_v60  ;;  %vm1927_vm4 = vcmp.eq.f32.partialorder %v1926_v5, 8.507059e+37 }
 0x2fa   :  { %2070 = vst.msk [vmem:[%s3419_s5 + $0x1f8] sm:$0xff] %vm96_vm0, %v2005_v0 }
 0x2fb   :  { %v2424_v21 = vpop.eup %2423  ;;  %v1906_v13 = vadd.f32 %v2422_v29, %v1905_v31  ;;  %v975_v8 = vmul.f32 1.442695, %v851_v45 }
 0x2fc   :  { %v2426_v54 = vpop.eup %2425  ;;  %v1042_v14 = vadd.f32 1.0, %v2424_v21 }
 0x2fd   :  { %v1910_v55 = vsel %vm1909_vm13, %v2422_v29, %v1906_v13  ;;  %v1918_v20 = vmul.f32 %v2426_v54, %v1041_v30  ;;  %vm1923_vm1 = vweird.f32 %v2426_v54 }
 0x2fe   :  { %v1915_v62 = vsel %vm1912_vm15, %v1914_v40, %v1910_v55  ;;  %2427 = vrcp.f32 %v1042_v14  ;;  %v782_v63 = vpop.f32.mrf.mxu2  ;;  %vm1924_vm3 = vmor %vm1922_vm2, %vm1923_vm1  ;;  %v1943_v10 = vand.u32 2147483648, %v1042_v14  ;;  %v1941_v37 = vand.u32 2147483647, %v1042_v14 }
 0x2ff   :  { %2064 = vst.msk [vmem:[%s3419_s5 + $0x1c8] sm:$0xff] %vm96_vm0, %v1915_v62  ;;  %v1919_v33 = vsub.f32 1.0, %v1918_v20  ;;  %2429 = vpow2.f32 %v975_v8  ;;  %v783_v50 = vadd.f32 %v3356_v15, %v782_v63  ;;  %vm1937_vm6 = vweird.f32 %v1042_v14 }
 0x300   :  { %v1944_v17 = vor.u32 1.1754944e-38, %v1943_v10  ;;  %vm1942_vm8 = vcmp.eq.f32.partialorder %v1941_v37, 8.507059e+37 }
 0x301   :  { %v1920_v3 = vmul.f32 %v2426_v54, %v1919_v33  ;;  %v852_v34 = vsub.f32 0.0, %v783_v50 }
 0x303   :  { %v1921_v35 = vadd.f32 %v2426_v54, %v1920_v3  ;;  %v977_v7 = vmul.f32 1.442695, %v852_v34 }
 0x304   :  { %v2428_v24 = vpop.eup %2427 }
 0x305   :  { %v2430_v4 = vpop.eup %2429  ;;  %v1925_v26 = vsel %vm1924_vm3, %v2426_v54, %v1921_v35  ;;  %v1933_v9 = vmul.f32 %v2428_v24, %v1042_v14  ;;  %2431 = vpow2.f32 %v977_v7  ;;  %vm1938_vm5 = vweird.f32 %v2428_v24 }
 0x306   :  { %v1930_v36 = vsel %vm1927_vm4, %v1929_v6, %v1925_v26  ;;  %v1043_v52 = vadd.f32 1.0, %v2430_v4  ;;  %vm1939_vm7 = vmor %vm1937_vm6, %vm1938_vm5 }
 0x307   :  { %2065 = vst.msk [vmem:[%s3419_s5 + $0x1d0] sm:$0xff] %vm96_vm0, %v1930_v36  ;;  %v1934_v49 = vsub.f32 1.0, %v1933_v9 }
 0x308   :  { %2433 = vrcp.f32 %v1043_v52  ;;  %v1958_v25 = vand.u32 2147483648, %v1043_v52  ;;  %v1956_v46 = vand.u32 2147483647, %v1043_v52  ;;  %vm1952_vm10 = vweird.f32 %v1043_v52 }
 0x309   :  { %v1935_v11 = vmul.f32 %v2428_v24, %v1934_v49 }
 0x30a   :  { %v1959_v58 = vor.u32 1.1754944e-38, %v1958_v25  ;;  %vm1957_vm12 = vcmp.eq.f32.partialorder %v1956_v46, 8.507059e+37 }
 0x30b   :  { %v1936_v15 = vadd.f32 %v2428_v24, %v1935_v11  ;;  %v2432_v16 = vpop.eup %2431 }
 0x30c   :  { %v1044_v48 = vadd.f32 1.0, %v2432_v16 }
 0x30d   :  { %v1940_v18 = vsel %vm1939_vm7, %v2428_v24, %v1936_v15 }
 0x30e   :  { %v2434_v57 = vpop.eup %2433  ;;  %v1945_v19 = vsel %vm1942_vm8, %v1944_v17, %v1940_v18  ;;  %2435 = vrcp.f32 %v1044_v48  ;;  %v1973_v59 = vand.u32 2147483648, %v1044_v48  ;;  %v1971_v39 = vand.u32 2147483647, %v1044_v48 }
 0x30f   :  { %2066 = vst.msk [vmem:[%s3419_s5 + $0x1d8] sm:$0xff] %vm96_vm0, %v1945_v19  ;;  %v1948_v22 = vmul.f32 %v2434_v57, %v1043_v52  ;;  %vm1953_vm9 = vweird.f32 %v2434_v57  ;;  %vm1967_vm14 = vweird.f32 %v1044_v48 }
 0x310   :  { %vm1954_vm11 = vmor %vm1952_vm10, %vm1953_vm9  ;;  %v1974_v41 = vor.u32 1.1754944e-38, %v1973_v59  ;;  %vm1972_vm1 = vcmp.eq.f32.partialorder %v1971_v39, 8.507059e+37 }
 0x311   :  { %v1949_v23 = vsub.f32 1.0, %v1948_v22 }
 0x313   :  { %v1950_v27 = vmul.f32 %v2434_v57, %v1949_v23 }
 0x314   :  { %v2436_v28 = vpop.eup %2435 }
 0x315   :  { %v1951_v29 = vadd.f32 %v2434_v57, %v1950_v27  ;;  %v1963_v30 = vmul.f32 %v2436_v28, %v1044_v48  ;;  %vm1968_vm13 = vweird.f32 %v2436_v28 }
 0x316   :  { %vm1969_vm15 = vmor %vm1967_vm14, %vm1968_vm13 }
 0x317   :  { %v1955_v32 = vsel %vm1954_vm11, %v2434_v57, %v1951_v29  ;;  %v1964_v61 = vsub.f32 1.0, %v1963_v30 }
 0x318   :  { %v1960_v56 = vsel %vm1957_vm12, %v1959_v58, %v1955_v32 }
 0x319   :  { %2067 = vst.msk [vmem:[%s3419_s5 + $0x1e0] sm:$0xff] %vm96_vm0, %v1960_v56  ;;  %v1965_v38 = vmul.f32 %v2436_v28, %v1964_v61 }
 0x31b   :  { %v1966_v2 = vadd.f32 %v2436_v28, %v1965_v38 }
 0x31d   :  { %v1970_v12 = vsel %vm1969_vm15, %v2436_v28, %v1966_v2 }
 0x31e   :  { %v1975_v42 = vsel %vm1972_vm1, %v1974_v41, %v1970_v12 }
 0x31f   :  { %2068 = vst.msk [vmem:[%s3419_s5 + $0x1e8] sm:$0xff] %vm96_vm0, %v1975_v42 }

</bundles_post_ra>
